<compile_context>
chip_gen: v5e
topology: v5e:2x2
jax: 0.10.0
libtpu: 0.0.40
codegen_flags: <defaults>
</compile_context>

<pallas_src>
import functools

import jax
import jax.numpy as jnp
from jax.experimental import pallas as pl
from jax.experimental.pallas import tpu as pltpu


def _round_up(x, m):
    return -(-x // m) * m


def _cdiv(a, b):
    return -(-a // b)


def _vmem_block_bytes(shape, dtype):
    """Approximate VMEM footprint of a block: minor dim padded to 128 lanes,
    second-minor padded to the sublane tile (8 for 4-byte, 16 for 2-byte)."""
    itemsize = jnp.dtype(dtype).itemsize
    sub = 8 * max(1, 4 // itemsize)
    dims = list(shape)
    if len(dims) >= 1:
        dims[-1] = _round_up(dims[-1], 128)
    if len(dims) >= 2:
        dims[-2] = _round_up(dims[-2], sub)
    n = 1
    for d in dims:
        n *= int(d)
    return n * itemsize


def _vmem_capacity_bytes():
    try:
        info = pltpu.get_tpu_info()
        return int(getattr(info, "vmem_capacity_bytes", 64 * 1024 * 1024))
    except Exception:
        return 64 * 1024 * 1024  # conservative (v7x per-core capacity)


def _conv_kernel(x_ref, w_ref, b_ref, o_ref, *, taps, tm):
    """One (n, j, m) grid step: tm output rows x tco output channels.

    x_ref: (L, Cin)        whole flattened zero-padded image (batch dim squeezed)
    w_ref: (k*k*Cin, tco)  weights in tap-major / Cin-minor contraction order
    b_ref: (1, tco)        f32 bias tile
    o_ref: (tm, tco)       output row/channel tile
    """
    m = pl.program_id(2)
    row0 = pl.multiple_of(m * tm, 8)          # tm is a multiple of 8
    # Gather the k*k shifted windows and fuse them into the contraction dim:
    # a single (tm, k*k*Cin) @ (k*k*Cin, tco) MXU matmul instead of k*k tiny-K
    # matmuls + k*k f32 accumulate sweeps through VMEM.
    lhs = jnp.concatenate(
        [x_ref[pl.ds(row0 + off, tm), :] for off in taps], axis=-1)
    acc = jnp.dot(lhs, w_ref[...], preferred_element_type=jnp.float32)
    # Bias add in f32, single cast + lane-dense store (no accumulator scratch).
    o_ref[...] = (acc + b_ref[...]).astype(o_ref.dtype)


@jax.jit
def conv2d_forward(x, weight, bias=None):
    """y = conv2d(x, weight, padding=k//2) + bias, via a Pallas TPU kernel.

    x:      [N, Cin, H, W]
    weight: [Cout, Cin, k, k]  (or None -> identity, matching kernel=0 case)
    bias:   [Cout] or None
    """
    if weight is None:
        # Module with kernel=0: forward is identity (bias is also None then).
        return x

    N, Ci, H, W = x.shape
    Co, Ci_w, kh, kw = weight.shape
    assert Ci == Ci_w, "channel mismatch"
    assert kh == kw and kh % 2 == 1, "only odd square kernels (same padding)"
    # TODO(synk): even kernel sizes (F.conv2d with padding=k//2 changes H/W) not supported.
    k = kh
    p = k // 2
    Hp, Wp = H + 2 * p, W + 2 * p
    m_out = H * Wp                 # output rows per image (incl. 2p pad cols/row)
    out_dtype = x.dtype
    itemsize = jnp.dtype(out_dtype).itemsize
    kk_ci = k * k * Ci

    # ---- tiling --------------------------------------------------------------
    co_pad = _round_up(Co, 128)                 # lane-dense output stores
    tco = 256 if co_pad % 256 == 0 else 128     # <=256: fills v6e/v7x MXU width,
                                                # never oversizes v5e's 128-wide MXU
    tm = min(512, _round_up(m_out, 8))          # spatial-row tile (bounds VMEM)
    mb = _cdiv(m_out, tm)
    m_pad = mb * tm

    # Rows of the flattened padded image needed so every tap offset is in-bounds
    # for every row block (guard rows are zeros and only feed discarded rows).
    needed_l = m_pad + 2 * p * Wp + 2 * p
    extra_h = _cdiv(max(needed_l - Hp * Wp, 0), Wp)
    Hp2 = Hp + extra_h
    L = Hp2 * Wp

    # ---- layout glue (NCHW -> padded, flattened channels-last rows) -----------
    # TODO(synk): a channels-last model would skip this transpose+pad HBM pass
    # (and the inverse slice+transpose on the output) entirely.
    x_nhwc = jnp.transpose(x, (0, 2, 3, 1))                          # [N,H,W,Ci]
    x_flat = jnp.pad(
        x_nhwc, ((0, 0), (p, p + extra_h), (p, p), (0, 0))).reshape(N, L, Ci)

    # Weight [Co,Ci,k,k] -> contraction-major [k*k*Ci, co_pad] matching the
    # in-kernel tap-concat order (dy, dx, c).  Cast to x.dtype as in the
    # PyTorch reference (w.to(x.dtype)).
    w2 = jnp.transpose(weight.astype(out_dtype), (2, 3, 1, 0)).reshape(kk_ci, Co)
    if co_pad != Co:
        w2 = jnp.pad(w2, ((0, 0), (0, co_pad - Co)))

    if bias is None:
        b2 = jnp.zeros((1, co_pad), jnp.float32)
    else:
        b2 = jnp.pad(bias.astype(jnp.float32).reshape(1, Co),
                     ((0, 0), (0, co_pad - Co)))

    taps = tuple(dy * Wp + dx for dy in range(k) for dx in range(k))

    # ---- VMEM budgeting (generation-aware, lane-padding-aware) ----------------
    vmem_budget = _vmem_capacity_bytes() * 7 // 8   # headroom for compiler scratch
    x_block = _vmem_block_bytes((1, L, Ci), out_dtype)
    big_x = x_block > vmem_budget // 4
    x_bufs = 1 if big_x else 2      # Buffered(1): x only changes with n anyway
    est = (x_bufs * x_block
           + 2 * _vmem_block_bytes((kk_ci, tco), out_dtype)
           + 2 * _vmem_block_bytes((1, tco), jnp.float32)
           + 2 * _vmem_block_bytes((1, tm, tco), out_dtype)
           + _vmem_block_bytes((tm, kk_ci), jnp.float32)    # fused LHS value
           + _vmem_block_bytes((tm, tco), jnp.float32))     # f32 matmul result
    vmem_limit = int(min(vmem_budget, max(32 * 1024 * 1024, 2 * est)))

    x_spec_kwargs = {"pipeline_mode": pl.Buffered(1)} if big_x else {}

    cost = pl.CostEstimate(
        flops=2 * N * Co * H * W * Ci * k * k,
        transcendentals=0,
        bytes_accessed=int(x.size * itemsize + weight.size * itemsize
                           + Co * 4 + N * Co * H * W * itemsize),
    )

    y_flat = pl.pallas_call(
        functools.partial(_conv_kernel, taps=taps, tm=tm),
        out_shape=jax.ShapeDtypeStruct((N, m_pad, co_pad), out_dtype),
        grid_spec=pltpu.PrefetchScalarGridSpec(
            num_scalar_prefetch=0,
            grid=(N, co_pad // tco, mb),
            in_specs=[
                pl.BlockSpec((None, L, Ci), lambda n, j, m: (n, 0, 0),
                             **x_spec_kwargs),                       # image (per n)
                pl.BlockSpec((kk_ci, tco), lambda n, j, m: (0, j)),  # weights
                pl.BlockSpec((1, tco), lambda n, j, m: (0, j)),      # bias
            ],
            out_specs=pl.BlockSpec((None, tm, tco), lambda n, j, m: (n, m, j)),
        ),
        compiler_params=pltpu.CompilerParams(
            dimension_semantics=("parallel", "parallel", "parallel"),
            vmem_limit_bytes=vmem_limit,
        ),
        cost_estimate=cost,
    )(x_flat, w2, b2)

    # Drop pad rows / pad columns / pad channels, back to NCHW.
    y = y_flat[:, :m_out, :Co].reshape(N, H, Wp, Co)[:, :, :W, :]
    return jnp.transpose(y, (0, 3, 1, 2))


def init_conv2d_params(key, in_channels, out_channels, kernel,
                       init_mode="kaiming_normal", init_weight=1.0, init_bias=0.0,
                       dtype=jnp.float32):
    """Re-implementation of weight_init() for the Conv2d module (JAX RNG)."""
    kw_, kb_ = jax.random.split(key)
    fan_in = in_channels * kernel * kernel
    fan_out = out_channels * kernel * kernel
    wshape = (out_channels, in_channels, kernel, kernel)
    bshape = (out_channels,)
    if init_mode == "kaiming_normal":
        w = jnp.sqrt(1.0 / fan_in) * jax.random.normal(kw_, wshape, dtype)
        b = jnp.sqrt(1.0 / fan_in) * jax.random.normal(kb_, bshape, dtype)
    elif init_mode == "xavier_normal":
        w = jnp.sqrt(2.0 / (fan_in + fan_out)) * jax.random.normal(kw_, wshape, dtype)
        b = jnp.sqrt(2.0 / (fan_in + fan_out)) * jax.random.normal(kb_, bshape, dtype)
    elif init_mode == "kaiming_uniform":
        w = jnp.sqrt(3.0 / fan_in) * (jax.random.uniform(kw_, wshape, dtype) * 2 - 1)
        b = jnp.sqrt(3.0 / fan_in) * (jax.random.uniform(kb_, bshape, dtype) * 2 - 1)
    elif init_mode == "xavier_uniform":
        w = jnp.sqrt(6.0 / (fan_in + fan_out)) * (jax.random.uniform(kw_, wshape, dtype) * 2 - 1)
        b = jnp.sqrt(6.0 / (fan_in + fan_out)) * (jax.random.uniform(kb_, bshape, dtype) * 2 - 1)
    else:
        raise ValueError(f'Invalid init mode "{init_mode}"')
    return w * init_weight, b * init_bias


if __name__ == "__main__":
    def _check(N, Cin, H, W, Cout, ksz, key):
        k_x, k_p, k_b = jax.random.split(key, 3)
        pad = ksz // 2
        x = jax.random.normal(k_x, (N, Cin, H, W), jnp.float32)
        # Module defaults: bias=True, init_mode='kaiming_normal', init_weight=1,
        # init_bias=0; use a nonzero bias so the bias path is exercised.
        weight, bias = init_conv2d_params(k_p, Cin, Cout, ksz)
        bias = bias + 0.1 * jax.random.normal(k_b, (Cout,), jnp.float32)

        y = jax.block_until_ready(conv2d_forward(x, weight, bias))

        # Reference: same-padded conv (zero padding, as F.conv2d(padding=k//2)) + bias.
        y_ref = jax.lax.conv_general_dilated(
            x, weight, window_strides=(1, 1),
            padding=[(pad, pad), (pad, pad)],
            dimension_numbers=("NCHW", "OIHW", "NCHW"),
        ) + bias.reshape(1, -1, 1, 1)

        assert y.shape == (N, Cout, H, W), y.shape
        assert jnp.allclose(y, y_ref, atol=1e-4, rtol=1e-4), \
            f"mismatch vs reference for case {(N, Cin, H, W, Cout, ksz)}"

    key = jax.random.PRNGKey(0)
    k1, k2 = jax.random.split(key)
    # Module-default-sized case.
    _check(2, 4, 16, 16, 8, 3, k1)
    # Larger case exercising the spatial-row tiling (mb > 1) and a 5x5 kernel.
    _check(1, 3, 24, 24, 5, 5, k2)

    print("KERNEL_OK")
</pallas_src>

<mosaic_0001>
module attributes {stable_mosaic.version = 11 : i64} {
  func.func @_conv_kernel(%arg0: i32, %arg1: i32, %arg2: i32, %arg3: memref<1x342x4xf32, #tpu.memory_space<vmem>>, %arg4: memref<36x128xf32, #tpu.memory_space<vmem>>, %arg5: memref<1x128xf32, #tpu.memory_space<vmem>>, %arg6: memref<1x288x128xf32, #tpu.memory_space<vmem>>) attributes {dimension_semantics = [#tpu.dimension_semantics<parallel>, #tpu.dimension_semantics<parallel>, #tpu.dimension_semantics<parallel>], iteration_bounds = array<i64: 2, 1, 1>, scalar_prefetch = 0 : i64, scratch_operands = 0 : i64, tpu.core_type = #tpu.core_type<tc>, window_params = [{transform_indices = @transform_0, window_bounds = array<i64: 1, 342, 4>}, {transform_indices = @transform_1, window_bounds = array<i64: 36, 128>}, {transform_indices = @transform_2, window_bounds = array<i64: 1, 128>}, {transform_indices = @transform_3, window_bounds = array<i64: 1, 288, 128>}]} {
    %c288_i32 = arith.constant 288 : i32
    %0 = arith.muli %arg2, %c288_i32 : i32
    %1 = tpu.assume_multiple %0, 8 : i32
    %c0_i32 = arith.constant 0 : i32
    %2 = arith.addi %1, %c0_i32 : i32
    %c0 = arith.constant 0 : index
    %3 = arith.index_cast %2 : i32 to index
    %c0_0 = arith.constant 0 : index
    %4 = vector.load %arg3[%c0, %3, %c0_0] : memref<1x342x4xf32, #tpu.memory_space<vmem>>, vector<1x288x4xf32>
    %5 = vector.shape_cast %4 : vector<1x288x4xf32> to vector<288x4xf32>
    %c1_i32 = arith.constant 1 : i32
    %6 = arith.addi %1, %c1_i32 : i32
    %c0_1 = arith.constant 0 : index
    %7 = arith.index_cast %6 : i32 to index
    %c0_2 = arith.constant 0 : index
    %8 = vector.load %arg3[%c0_1, %7, %c0_2] : memref<1x342x4xf32, #tpu.memory_space<vmem>>, vector<1x288x4xf32>
    %9 = vector.shape_cast %8 : vector<1x288x4xf32> to vector<288x4xf32>
    %c2_i32 = arith.constant 2 : i32
    %10 = arith.addi %1, %c2_i32 : i32
    %c0_3 = arith.constant 0 : index
    %11 = arith.index_cast %10 : i32 to index
    %c0_4 = arith.constant 0 : index
    %12 = vector.load %arg3[%c0_3, %11, %c0_4] : memref<1x342x4xf32, #tpu.memory_space<vmem>>, vector<1x288x4xf32>
    %13 = vector.shape_cast %12 : vector<1x288x4xf32> to vector<288x4xf32>
    %c18_i32 = arith.constant 18 : i32
    %14 = arith.addi %1, %c18_i32 : i32
    %c0_5 = arith.constant 0 : index
    %15 = arith.index_cast %14 : i32 to index
    %c0_6 = arith.constant 0 : index
    %16 = vector.load %arg3[%c0_5, %15, %c0_6] : memref<1x342x4xf32, #tpu.memory_space<vmem>>, vector<1x288x4xf32>
    %17 = vector.shape_cast %16 : vector<1x288x4xf32> to vector<288x4xf32>
    %c19_i32 = arith.constant 19 : i32
    %18 = arith.addi %1, %c19_i32 : i32
    %c0_7 = arith.constant 0 : index
    %19 = arith.index_cast %18 : i32 to index
    %c0_8 = arith.constant 0 : index
    %20 = vector.load %arg3[%c0_7, %19, %c0_8] : memref<1x342x4xf32, #tpu.memory_space<vmem>>, vector<1x288x4xf32>
    %21 = vector.shape_cast %20 : vector<1x288x4xf32> to vector<288x4xf32>
    %c20_i32 = arith.constant 20 : i32
    %22 = arith.addi %1, %c20_i32 : i32
    %c0_9 = arith.constant 0 : index
    %23 = arith.index_cast %22 : i32 to index
    %c0_10 = arith.constant 0 : index
    %24 = vector.load %arg3[%c0_9, %23, %c0_10] : memref<1x342x4xf32, #tpu.memory_space<vmem>>, vector<1x288x4xf32>
    %25 = vector.shape_cast %24 : vector<1x288x4xf32> to vector<288x4xf32>
    %c36_i32 = arith.constant 36 : i32
    %26 = arith.addi %1, %c36_i32 : i32
    %c0_11 = arith.constant 0 : index
    %27 = arith.index_cast %26 : i32 to index
    %c0_12 = arith.constant 0 : index
    %28 = vector.load %arg3[%c0_11, %27, %c0_12] : memref<1x342x4xf32, #tpu.memory_space<vmem>>, vector<1x288x4xf32>
    %29 = vector.shape_cast %28 : vector<1x288x4xf32> to vector<288x4xf32>
    %c37_i32 = arith.constant 37 : i32
    %30 = arith.addi %1, %c37_i32 : i32
    %c0_13 = arith.constant 0 : index
    %31 = arith.index_cast %30 : i32 to index
    %c0_14 = arith.constant 0 : index
    %32 = vector.load %arg3[%c0_13, %31, %c0_14] : memref<1x342x4xf32, #tpu.memory_space<vmem>>, vector<1x288x4xf32>
    %33 = vector.shape_cast %32 : vector<1x288x4xf32> to vector<288x4xf32>
    %c38_i32 = arith.constant 38 : i32
    %34 = arith.addi %1, %c38_i32 : i32
    %c0_15 = arith.constant 0 : index
    %35 = arith.index_cast %34 : i32 to index
    %c0_16 = arith.constant 0 : index
    %36 = vector.load %arg3[%c0_15, %35, %c0_16] : memref<1x342x4xf32, #tpu.memory_space<vmem>>, vector<1x288x4xf32>
    %37 = vector.shape_cast %36 : vector<1x288x4xf32> to vector<288x4xf32>
    %38 = tpu.concatenate %5, %9, %13, %17, %21, %25, %29, %33, %37 in 1 : vector<288x4xf32>, vector<288x4xf32>, vector<288x4xf32>, vector<288x4xf32>, vector<288x4xf32>, vector<288x4xf32>, vector<288x4xf32>, vector<288x4xf32>, vector<288x4xf32> -> vector<288x36xf32>
    %c0_17 = arith.constant 0 : index
    %c0_18 = arith.constant 0 : index
    %39 = vector.load %arg4[%c0_17, %c0_18] : memref<36x128xf32, #tpu.memory_space<vmem>>, vector<36x128xf32>
    %cst = arith.constant dense<0.000000e+00> : vector<288x128xf32>
    %40 = tpu.matmul %38, %39, %cst {dimension_numbers = #tpu.dot_dimension_numbers<[1], [0], [0], [1], [0, 0, 1, 1], [], []>} : vector<288x36xf32>, vector<36x128xf32>, vector<288x128xf32> -> vector<288x128xf32>
    %c0_19 = arith.constant 0 : index
    %c0_20 = arith.constant 0 : index
    %41 = vector.load %arg5[%c0_19, %c0_20] : memref<1x128xf32, #tpu.memory_space<vmem>>, vector<1x128xf32>
    %42 = vector.broadcast %41 : vector<1x128xf32> to vector<288x128xf32>
    %43 = arith.addf %40, %42 : vector<288x128xf32>
    %c0_21 = arith.constant 0 : index
    %c0_22 = arith.constant 0 : index
    %c0_23 = arith.constant 0 : index
    %44 = vector.load %arg6[%c0_21, %c0_22, %c0_23] : memref<1x288x128xf32, #tpu.memory_space<vmem>>, vector<1x288x128xf32>
    %45 = vector.shape_cast %44 : vector<1x288x128xf32> to vector<288x128xf32>
    %46 = vector.shape_cast %43 : vector<288x128xf32> to vector<1x288x128xf32>
    tpu.vector_store %arg6[%c0_21, %c0_22, %c0_23], %46 {strides = array<i32>} : memref<1x288x128xf32, #tpu.memory_space<vmem>>, vector<1x288x128xf32>,
    return
  }
  func.func @transform_0(%arg0: i32, %arg1: i32, %arg2: i32) -> (i32, i32, i32) {
    %c0_i32 = arith.constant 0 : i32
    %c0_i32_0 = arith.constant 0 : i32
    %c0_i32_1 = arith.constant 0 : i32
    return %arg0, %c0_i32, %c0_i32_0 : i32, i32, i32
  }
  func.func @transform_1(%arg0: i32, %arg1: i32, %arg2: i32) -> (i32, i32) {
    %c0_i32 = arith.constant 0 : i32
    %c0_i32_0 = arith.constant 0 : i32
    return %c0_i32, %arg1 : i32, i32
  }
  func.func @transform_2(%arg0: i32, %arg1: i32, %arg2: i32) -> (i32, i32) {
    %c0_i32 = arith.constant 0 : i32
    %c0_i32_0 = arith.constant 0 : i32
    return %c0_i32, %arg1 : i32, i32
  }
  func.func @transform_3(%arg0: i32, %arg1: i32, %arg2: i32) -> (i32, i32, i32) {
    %c0_i32 = arith.constant 0 : i32
    return %arg0, %arg2, %arg1 : i32, i32, i32
  }
}

</mosaic_0001>

<bundles_post_ra>
// kernel: conv2d_forward.1
= control target key start
LH: loop header
LB: loop body
LE: loop exit
PB: predicated region body
PF: predicated region fallthrough
CT: control target
= control target key end

     0   :  { %s2898_s12 = smov 0   ;;  %s2900_s13 = smov 0   ;;  %s4810_s0 = inlined_call_operand.vmem [shape: f32[2,342,4], index: 0, kind: input, shape index: {}]   ;;  %s4811_s1 = inlined_call_operand.vmem [shape: f32[36,128], index: 1, kind: input, shape index: {}]   ;;  %s4812_s2 = inlined_call_operand.vmem [shape: f32[1,128], index: 2, kind: input, shape index: {}]   ;;  %s4813_s3 = inlined_call_operand.vmem [shape: f32[2,288,128], index: 3, kind: output, shape index: {}]  }
   0x1   :  { %s2902_s14 = smov 0  }
   0x2 LB: > { %s32_s15 = sadd.s32 1, %s2864_s13  ;;  %p2466_p0 = scmp.ge.s32.totalorder %s2868_s14, 1  ;;  %s2868_s14 = sphi %s2902_s14, %s13_s14   ;;  %s2864_s13 = sphi %s2900_s13, %s5061_s13   ;;  %s2860_s12 = sphi %s2898_s12, %s5060_s12  }
   0x3   : > { %p34_p1 = scmp.ge.s32.totalorder %s32_s15, 2  ;;  %p177_p2 = scmp.lt.s32.totalorder %s2868_s14, 3 }
   0x5   : > { %s5063_s15 = smov (%p34_p1, %s32_s15), 0  ;;  %p178_p3 = pnand %p2466_p0, %p177_p2 }
   0x7   : > { %181 = sbr.rel (%p178_p3) target bundleno = 1026 (0x402), region = 32 }
   0xc   : > { %p215_p4 = scmp.lt.s32.totalorder %s2860_s12, 1  ;;  %s2870_s20 = smov 4   ;;  %vm1734_vm0 = vcmask 31744   ;;  %vm1771_vm1 = vcmask 64512   ;;  %vm1808_vm2 = vcmask 97280   ;;  %vm1845_vm3 = vcmask 130048  }
   0xd   : > { %s2871_s21 = smov 8   ;;  %s2872_s22 = smov 12   ;;  %vm1882_vm4 = vcmask 162816   ;;  %vm1919_vm5 = vcmask 195584   ;;  %vm2148_vm6 = vcmask 1043456   ;;  %vm1956_vm7 = vcmask 228352  }
   0xe   : > { %s5065_s12 = smov (!%p215_p4, %s2860_s12), 1  ;;  %s2873_s23 = smov 16   ;;  %vm1993_vm8 = vcmask 261120   ;;  %vm2039_vm9 = vcmask 293888  }
   0xf   : > { %s2811_s16 = smul.u32 344, %s5065_s12  ;;  %s2874_s24 = smov 20  }
  0x10   : > { %s2875_s25 = smov 24   ;;  %s2876_s26 = smov 28  }
  0x11   : > { %s2922_s19 = scalar_lea.vmem %s4810_s0, %s2811_s16  ;;  %s2877_s27 = smov 32  }
  0x12   : > { %v2473_v0 = vld [vmem:[%s2922_s19 + $0x21] sm:$0xff]  ;;  %v2471_v1 = vld [vmem:[%s2922_s19 + $0x11] sm:$0xff]  ;;  %v2474_v3 = vld [vmem:[%s2922_s19 + $0x29] sm:$0xff]  ;;  %s2812_s11 = smul.u32 288, %s5065_s12 }
  0x13   : > { %v2469_v2 = vld [vmem:[%s2922_s19 + $0x1] sm:$0xff]  ;;  %626 = vrot.lane.b32.xlu2 %v2473_v0, %s2870_s20  ;;  %622 = vrot.lane.b32.xlu1 %v2471_v1, %s2870_s20  ;;  %v2472_v4 = vld [vmem:[%s2922_s19 + $0x19] sm:$0xff] }
  0x14   : > { %618 = vrot.lane.b32.xlu0 %v2469_v2, %s2870_s20  ;;  %v2470_v5 = vld [vmem:[%s2922_s19 + $0x9] sm:$0xff]  ;;  %v2477_v6 = vld [vmem:[%s2922_s19 + $0x41] sm:$0xff]  ;;  %v2476_v7 = vld [vmem:[%s2922_s19 + $0x39] sm:$0xff] }
  0x15   : > { %v2475_v8 = vld [vmem:[%s2922_s19 + $0x31] sm:$0xff]  ;;  %v2480_v9 = vld [vmem:[%s2922_s19 + $0x59] sm:$0xff]  ;;  %v2478_v11 = vld [vmem:[%s2922_s19 + $0x49] sm:$0xff] }
  0x16   : > { %v2479_v10 = vld [vmem:[%s2922_s19 + $0x51] sm:$0xff]  ;;  %v2482_v13 = vld [vmem:[%s2922_s19 + $0x69] sm:$0xff]  ;;  %v2481_v14 = vld [vmem:[%s2922_s19 + $0x61] sm:$0xff] }
  0x17   : > { %v2483_v12 = vld [vmem:[%s2922_s19 + $0x71] sm:$0xff]  ;;  %v2486_v15 = vld [vmem:[%s2922_s19 + $0x89] sm:$0xff]  ;;  %v2485_v16 = vld [vmem:[%s2922_s19 + $0x81] sm:$0xff] }
  0x18   : > { %v2484_v17 = vld [vmem:[%s2922_s19 + $0x79] sm:$0xff]  ;;  %v2489_v18 = vld [vmem:[%s2922_s19 + $0xa1] sm:$0xff]  ;;  %v2487_v20 = vld [vmem:[%s2922_s19 + $0x91] sm:$0xff] }
  0x19   : > { %v2488_v19 = vld [vmem:[%s2922_s19 + $0x99] sm:$0xff]  ;;  %v2491_v22 = vld [vmem:[%s2922_s19 + $0xb1] sm:$0xff]  ;;  %v2490_v23 = vld [vmem:[%s2922_s19 + $0xa9] sm:$0xff] }
  0x1a   : > { %v2492_v21 = vld [vmem:[%s2922_s19 + $0xb9] sm:$0xff]  ;;  %v2495_v24 = vld [vmem:[%s2922_s19 + $0xd1] sm:$0xff]  ;;  %v2494_v25 = vld [vmem:[%s2922_s19 + $0xc9] sm:$0xff] }
  0x1b   : > { %628 = vrot.lane.b32.xlu2 %v2474_v3, %s2870_s20  ;;  %624 = vrot.lane.b32.xlu1 %v2472_v4, %s2870_s20  ;;  %v2493_v26 = vld [vmem:[%s2922_s19 + $0xc1] sm:$0xff]  ;;  %v2498_v27 = vld [vmem:[%s2922_s19 + $0xe9] sm:$0xff] }
  0x1c   : > { %620 = vrot.lane.b32.xlu0 %v2470_v5, %s2870_s20  ;;  %v2497_v28 = vld [vmem:[%s2922_s19 + $0xe1] sm:$0xff]  ;;  %v2496_v29 = vld [vmem:[%s2922_s19 + $0xd9] sm:$0xff]  ;;  %v2499_v32 = vld [vmem:[%s2922_s19 + $0xf1] sm:$0xff] }
  0x1d   : > { %v2501_v30 = vld [vmem:[%s2922_s19 + $0x101] sm:$0xff]  ;;  %v2500_v31 = vld [vmem:[%s2922_s19 + $0xf9] sm:$0xff]  ;;  %v2503_v34 = vld [vmem:[%s2922_s19 + $0x111] sm:$0xff] }
  0x1e   : > { %v2504_v33 = vld [vmem:[%s2922_s19 + $0x119] sm:$0xff]  ;;  %v2502_v35 = vld [vmem:[%s2922_s19 + $0x109] sm:$0xff] }
  0x1f   : > { %v2999_v37 = vld [vmem:[%s2922_s19 + $0x12] sm:$0xff]  ;;  %v2506_v38 = vld [vmem:[%s2922_s19 + $0xa] sm:$0xff]  ;;  %v2505_v39 = vld [vmem:[%s2922_s19 + $0x2] sm:$0xff] }
  0x20   : > { %v3010_v41 = vld [vmem:[%s2922_s19 + $0x2a] sm:$0xff]  ;;  %v3013_v42 = vld [vmem:[%s2922_s19 + $0x22] sm:$0xff]  ;;  %v3016_v43 = vld [vmem:[%s2922_s19 + $0x1a] sm:$0xff] }
  0x21   : > { %v3027_v45 = vld [vmem:[%s2922_s19 + $0x42] sm:$0xff]  ;;  %v3030_v46 = vld [vmem:[%s2922_s19 + $0x3a] sm:$0xff]  ;;  %v3033_v47 = vld [vmem:[%s2922_s19 + $0x32] sm:$0xff] }
  0x22   : > { %v3048_v51 = vld [vmem:[%s2922_s19 + $0x5a] sm:$0xff]  ;;  %v3051_v52 = vld [vmem:[%s2922_s19 + $0x52] sm:$0xff]  ;;  %v3054_v53 = vld [vmem:[%s2922_s19 + $0x4a] sm:$0xff] }
  0x23   : > { %634 = vrot.lane.b32.xlu2 %v2477_v6, %s2870_s20  ;;  %632 = vrot.lane.b32.xlu1 %v2476_v7, %s2870_s20  ;;  %v3069_v57 = vld [vmem:[%s2922_s19 + $0x72] sm:$0xff]  ;;  %v3072_v58 = vld [vmem:[%s2922_s19 + $0x6a] sm:$0xff] }
  0x24   : > { %630 = vrot.lane.b32.xlu0 %v2475_v8, %s2870_s20  ;;  %v3075_v59 = vld [vmem:[%s2922_s19 + $0x62] sm:$0xff]  ;;  %v3090_v63 = vld [vmem:[%s2922_s19 + $0x8a] sm:$0xff]  ;;  %v3096_v1 = vld [vmem:[%s2922_s19 + $0x7a] sm:$0xff] }
  0x25   : > { %v3093_v0 = vld [vmem:[%s2922_s19 + $0x82] sm:$0xff]  ;;  %v3114_v6 = vld [vmem:[%s2922_s19 + $0x9a] sm:$0xff]  ;;  %v3117_v7 = vld [vmem:[%s2922_s19 + $0x92] sm:$0xff] }
  0x26   : > { %v3111_v5 = vld [vmem:[%s2922_s19 + $0xa2] sm:$0xff] }
  0x2b   : > { %640 = vrot.lane.b32.xlu2 %v2480_v9, %s2870_s20  ;;  %638 = vrot.lane.b32.xlu1 %v2479_v10, %s2870_s20 }
  0x2c   : > { %636 = vrot.lane.b32.xlu0 %v2478_v11, %s2870_s20  ;;  %v3132_v11 = vld [vmem:[%s2922_s19 + $0xba] sm:$0xff] }
  0x33   : > { %646 = vrot.lane.b32.xlu2 %v2483_v12, %s2870_s20  ;;  %644 = vrot.lane.b32.xlu1 %v2482_v13, %s2870_s20  ;;  %v3135_v12 = vld [vmem:[%s2922_s19 + $0xb2] sm:$0xff]  ;;  %v3138_v13 = vld [vmem:[%s2922_s19 + $0xaa] sm:$0xff] }
  0x34   : > { %642 = vrot.lane.b32.xlu0 %v2481_v14, %s2870_s20 }
  0x3b   : > { %652 = vrot.lane.b32.xlu2 %v2486_v15, %s2870_s20  ;;  %650 = vrot.lane.b32.xlu1 %v2485_v16, %s2870_s20 }
  0x3c   : > { %648 = vrot.lane.b32.xlu0 %v2484_v17, %s2870_s20  ;;  %v3153_v17 = vld [vmem:[%s2922_s19 + $0xd2] sm:$0xff] }
  0x43   : > { %658 = vrot.lane.b32.xlu2 %v2489_v18, %s2870_s20  ;;  %656 = vrot.lane.b32.xlu1 %v2488_v19, %s2870_s20  ;;  %v3156_v18 = vld [vmem:[%s2922_s19 + $0xca] sm:$0xff]  ;;  %v3159_v19 = vld [vmem:[%s2922_s19 + $0xc2] sm:$0xff] }
  0x44   : > { %654 = vrot.lane.b32.xlu0 %v2487_v20, %s2870_s20 }
  0x4b   : > { %664 = vrot.lane.b32.xlu2 %v2492_v21, %s2870_s20  ;;  %662 = vrot.lane.b32.xlu1 %v2491_v22, %s2870_s20 }
  0x4c   : > { %660 = vrot.lane.b32.xlu0 %v2490_v23, %s2870_s20  ;;  %v3174_v23 = vld [vmem:[%s2922_s19 + $0xea] sm:$0xff] }
  0x53   : > { %670 = vrot.lane.b32.xlu2 %v2495_v24, %s2870_s20  ;;  %668 = vrot.lane.b32.xlu1 %v2494_v25, %s2870_s20  ;;  %v3177_v24 = vld [vmem:[%s2922_s19 + $0xe2] sm:$0xff]  ;;  %v3180_v25 = vld [vmem:[%s2922_s19 + $0xda] sm:$0xff] }
  0x54   : > { %666 = vrot.lane.b32.xlu0 %v2493_v26, %s2870_s20 }
  0x5b   : > { %676 = vrot.lane.b32.xlu2 %v2498_v27, %s2870_s20  ;;  %674 = vrot.lane.b32.xlu1 %v2497_v28, %s2870_s20 }
  0x5c   : > { %672 = vrot.lane.b32.xlu0 %v2496_v29, %s2870_s20  ;;  %v3195_v29 = vld [vmem:[%s2922_s19 + $0x102] sm:$0xff] }
  0x63   : > { %682 = vrot.lane.b32.xlu2 %v2501_v30, %s2870_s20  ;;  %680 = vrot.lane.b32.xlu1 %v2500_v31, %s2870_s20  ;;  %v3198_v30 = vld [vmem:[%s2922_s19 + $0xfa] sm:$0xff]  ;;  %v3201_v31 = vld [vmem:[%s2922_s19 + $0xf2] sm:$0xff] }
  0x64   : > { %678 = vrot.lane.b32.xlu0 %v2499_v32, %s2870_s20 }
  0x6b   : > { %688 = vrot.lane.b32.xlu2 %v2504_v33, %s2870_s20  ;;  %686 = vrot.lane.b32.xlu1 %v2503_v34, %s2870_s20 }
  0x6c   : > { %684 = vrot.lane.b32.xlu0 %v2502_v35, %s2870_s20  ;;  %v3216_v35 = vld [vmem:[%s2922_s19 + $0x11a] sm:$0xff]  ;;  %s4676_s20 = scalar_lea.vmem %s4813_s3, %s2812_s11 }
  0x6d   : > { %v2996_v36 = vpop.permute.xlu2 %626 }
  0x6e   : > { %4818 = vst [vmem:[#allocation2_spill] sm:$0xff] %v2996_v36  ;;  %v3714_v36 = vld [vmem:[%s2922_s19 + $0xec] sm:$0xff] }
  0x73   : > { %766 = vrot.lane.b32.xlu2 %v2999_v37, %s2871_s21  ;;  %764 = vrot.lane.b32.xlu1 %v2506_v38, %s2871_s21  ;;  %v3219_v38 = vld [vmem:[%s2922_s19 + $0x112] sm:$0xff] }
  0x74   : > { %762 = vrot.lane.b32.xlu0 %v2505_v39, %s2871_s21  ;;  %v3222_v39 = vld [vmem:[%s2922_s19 + $0x10a] sm:$0xff] }
  0x75   : > { %v3007_v40 = vpop.permute.xlu2 %628 }
  0x7b   : > { %772 = vrot.lane.b32.xlu2 %v3010_v41, %s2871_s21  ;;  %770 = vrot.lane.b32.xlu1 %v3013_v42, %s2871_s21 }
  0x7c   : > { %768 = vrot.lane.b32.xlu0 %v3016_v43, %s2871_s21 }
  0x7d   : > { %v3024_v44 = vpop.permute.xlu2 %634 }
  0x83   : > { %778 = vrot.lane.b32.xlu2 %v3027_v45, %s2871_s21  ;;  %776 = vrot.lane.b32.xlu1 %v3030_v46, %s2871_s21 }
  0x84   : > { %774 = vrot.lane.b32.xlu0 %v3033_v47, %s2871_s21 }
  0x85   : > { %v3041_v48 = vpop.permute.xlu2 %640  ;;  %v3043_v49 = vpop.permute.xlu1 %622 }
  0x86   : > { %v3045_v50 = vpop.permute.xlu0 %618 }
  0x8b   : > { %784 = vrot.lane.b32.xlu2 %v3048_v51, %s2871_s21  ;;  %782 = vrot.lane.b32.xlu1 %v3051_v52, %s2871_s21 }
  0x8c   : > { %780 = vrot.lane.b32.xlu0 %v3054_v53, %s2871_s21 }
  0x8d   : > { %v3062_v54 = vpop.permute.xlu2 %646  ;;  %v3064_v55 = vpop.permute.xlu1 %624 }
  0x8e   : > { %4819 = vst [vmem:[#allocation3_spill] sm:$0xff] %v3062_v54  ;;  %v3066_v56 = vpop.permute.xlu0 %620  ;;  %v3711_v54 = vld [vmem:[%s2922_s19 + $0xf4] sm:$0xff] }
  0x8f   : > { %4820 = vst [vmem:[#allocation4_spill] sm:$0xff] %v3064_v55  ;;  %v3708_v55 = vld [vmem:[%s2922_s19 + $0xfc] sm:$0xff] }
  0x93   : > { %790 = vrot.lane.b32.xlu2 %v3069_v57, %s2871_s21  ;;  %788 = vrot.lane.b32.xlu1 %v3072_v58, %s2871_s21 }
  0x94   : > { %786 = vrot.lane.b32.xlu0 %v3075_v59, %s2871_s21 }
  0x95   : > { %v3083_v60 = vpop.permute.xlu2 %652  ;;  %v3085_v61 = vpop.permute.xlu1 %632 }
  0x96   : > { %4821 = vst [vmem:[#allocation5_spill] sm:$0xff] %v3083_v60  ;;  %v3087_v62 = vpop.permute.xlu0 %630  ;;  %v3630_v60 = vld [vmem:[%s2922_s19 + $0x8c] sm:$0xff] }
  0x97   : > { %4822 = vst [vmem:[#allocation6_spill] sm:$0xff] %v3085_v61  ;;  %v3627_v61 = vld [vmem:[%s2922_s19 + $0x94] sm:$0xff] }
  0x98   : > { %4823 = vst [vmem:[#allocation7_spill] sm:$0xff] %v3087_v62  ;;  %v3624_v62 = vld [vmem:[%s2922_s19 + $0x9c] sm:$0xff] }
  0x9b   : > { %796 = vrot.lane.b32.xlu2 %v3090_v63, %s2871_s21  ;;  %794 = vrot.lane.b32.xlu1 %v3093_v0, %s2871_s21 }
  0x9c   : > { %792 = vrot.lane.b32.xlu0 %v3096_v1, %s2871_s21 }
  0x9d   : > { %v3104_v2 = vpop.permute.xlu2 %658  ;;  %v3106_v3 = vpop.permute.xlu1 %638 }
  0x9e   : > { %4824 = vst [vmem:[#allocation8_spill] sm:$0xff] %v3104_v2  ;;  %v3108_v4 = vpop.permute.xlu0 %636 }
  0x9f   : > { %4825 = vst [vmem:[#allocation9_spill] sm:$0xff] %v3106_v3 }
  0xa0   : > { %4826 = vst [vmem:[#allocation10_spill] sm:$0xff] %v3108_v4 }
  0xa3   : > { %802 = vrot.lane.b32.xlu2 %v3111_v5, %s2871_s21  ;;  %800 = vrot.lane.b32.xlu1 %v3114_v6, %s2871_s21 }
  0xa4   : > { %798 = vrot.lane.b32.xlu0 %v3117_v7, %s2871_s21 }
  0xa5   : > { %v3125_v8 = vpop.permute.xlu2 %664  ;;  %v3127_v9 = vpop.permute.xlu1 %644 }
  0xa6   : > { %4827 = vst [vmem:[#allocation11_spill] sm:$0xff] %v3125_v8  ;;  %v3129_v10 = vpop.permute.xlu0 %642  ;;  %v3567_v8 = vld [vmem:[%s2922_s19 + $0x44] sm:$0xff] }
  0xa7   : > { %4828 = vst [vmem:[#allocation12_spill] sm:$0xff] %v3127_v9  ;;  %v3564_v9 = vld [vmem:[%s2922_s19 + $0x4c] sm:$0xff] }
  0xa8   : > { %4829 = vst [vmem:[#allocation13_spill] sm:$0xff] %v3129_v10  ;;  %v3546_v10 = vld [vmem:[%s2922_s19 + $0x2c] sm:$0xff] }
  0xab   : > { %808 = vrot.lane.b32.xlu2 %v3132_v11, %s2871_s21  ;;  %806 = vrot.lane.b32.xlu1 %v3135_v12, %s2871_s21 }
  0xac   : > { %804 = vrot.lane.b32.xlu0 %v3138_v13, %s2871_s21 }
  0xad   : > { %v3146_v14 = vpop.permute.xlu2 %670  ;;  %v3148_v15 = vpop.permute.xlu1 %650 }
  0xae   : > { %4830 = vst [vmem:[#allocation14_spill] sm:$0xff] %v3146_v14  ;;  %v3150_v16 = vpop.permute.xlu0 %648  ;;  %v2600_v14 = vld [vmem:[%s2922_s19 + $0xcb] sm:$0xff] }
  0xaf   : > { %4831 = vst [vmem:[#allocation15_spill] sm:$0xff] %v3148_v15  ;;  %v2595_v15 = vld [vmem:[%s2922_s19 + $0xa3] sm:$0xff] }
  0xb0   : > { %4832 = vst [vmem:[#allocation16_spill] sm:$0xff] %v3150_v16  ;;  %v2596_v16 = vld [vmem:[%s2922_s19 + $0xab] sm:$0xff] }
  0xb3   : > { %814 = vrot.lane.b32.xlu2 %v3153_v17, %s2871_s21  ;;  %812 = vrot.lane.b32.xlu1 %v3156_v18, %s2871_s21 }
  0xb4   : > { %810 = vrot.lane.b32.xlu0 %v3159_v19, %s2871_s21 }
  0xb5   : > { %v3167_v20 = vpop.permute.xlu2 %676  ;;  %v3169_v21 = vpop.permute.xlu1 %656 }
  0xb6   : > { %4833 = vst [vmem:[#allocation17_spill] sm:$0xff] %v3167_v20  ;;  %v3171_v22 = vpop.permute.xlu0 %654 }
  0xb7   : > { %4834 = vst [vmem:[#allocation18_spill] sm:$0xff] %v3169_v21 }
  0xb8   : > { %4835 = vst [vmem:[#allocation19_spill] sm:$0xff] %v3171_v22 }
  0xbb   : > { %820 = vrot.lane.b32.xlu2 %v3174_v23, %s2871_s21  ;;  %818 = vrot.lane.b32.xlu1 %v3177_v24, %s2871_s21 }
  0xbc   : > { %816 = vrot.lane.b32.xlu0 %v3180_v25, %s2871_s21 }
  0xbd   : > { %v3188_v26 = vpop.permute.xlu2 %682  ;;  %v3190_v27 = vpop.permute.xlu1 %662 }
  0xbe   : > { %4836 = vst [vmem:[#allocation20_spill] sm:$0xff] %v3188_v26  ;;  %v3192_v28 = vpop.permute.xlu0 %660 }
  0xbf   : > { %4837 = vst [vmem:[#allocation21_spill] sm:$0xff] %v3190_v27  ;;  %v2594_v27 = vld [vmem:[%s2922_s19 + $0x9b] sm:$0xff] }
  0xc0   : > { %4838 = vst [vmem:[#allocation22_spill] sm:$0xff] %v3192_v28  ;;  %v2589_v28 = vld [vmem:[%s2922_s19 + $0x73] sm:$0xff] }
  0xc3   : > { %826 = vrot.lane.b32.xlu2 %v3195_v29, %s2871_s21  ;;  %824 = vrot.lane.b32.xlu1 %v3198_v30, %s2871_s21 }
  0xc4   : > { %822 = vrot.lane.b32.xlu0 %v3201_v31, %s2871_s21 }
  0xc5   : > { %v3209_v32 = vpop.permute.xlu2 %688  ;;  %v3211_v33 = vpop.permute.xlu1 %668 }
  0xc6   : > { %4839 = vst [vmem:[#allocation23_spill] sm:$0xff] %v3211_v33  ;;  %v3213_v34 = vpop.permute.xlu0 %666 }
  0xc7   : > { %4840 = vst [vmem:[#allocation24_spill] sm:$0xff] %v3213_v34 }
  0xcb   : > { %832 = vrot.lane.b32.xlu2 %v3216_v35, %s2871_s21  ;;  %830 = vrot.lane.b32.xlu1 %v3219_v38, %s2871_s21 }
  0xcc   : > { %828 = vrot.lane.b32.xlu0 %v3222_v39, %s2871_s21 }
  0xcd   : > { %v3230_v26 = vpop.permute.xlu2 %766  ;;  %v3232_v20 = vpop.permute.xlu1 %674 }
  0xce   : > { %4841 = vst [vmem:[#allocation25_spill] sm:$0xff] %v3232_v20  ;;  %v3234_v21 = vpop.permute.xlu0 %672  ;;  %v2581_v20 = vld [vmem:[%s2922_s19 + $0x33] sm:$0xff] }
  0xcf   : > { %4842 = vst [vmem:[#allocation26_spill] sm:$0xff] %v3234_v21  ;;  %v2583_v21 = vld [vmem:[%s2922_s19 + $0x43] sm:$0xff] }
  0xd3   : > { %910 = vrot.lane.b32.xlu2 %v3013_v42, %s2872_s22  ;;  %908 = vrot.lane.b32.xlu1 %v3016_v43, %s2872_s22 }
  0xd4   : > { %906 = vrot.lane.b32.xlu0 %v2999_v37, %s2872_s22 }
  0xd5   : > { %v3242_v22 = vpop.permute.xlu2 %772  ;;  %v3244_v34 = vpop.permute.xlu1 %680 }
  0xd6   : > { %4843 = vst [vmem:[#allocation27_spill] sm:$0xff] %v3244_v34  ;;  %v3246_v33 = vpop.permute.xlu0 %678  ;;  %v2575_v34 = vld [vmem:[%s2922_s19 + $0x122] sm:$0xff] }
  0xd7   : > { %4844 = vst [vmem:[#allocation28_spill] sm:$0xff] %v3246_v33  ;;  %v2579_v33 = vld [vmem:[%s2922_s19 + $0x23] sm:$0xff] }
  0xdb   : > { %916 = vrot.lane.b32.xlu2 %v3030_v46, %s2872_s22  ;;  %914 = vrot.lane.b32.xlu1 %v3033_v47, %s2872_s22 }
  0xdc   : > { %912 = vrot.lane.b32.xlu0 %v3010_v41, %s2872_s22 }
  0xdd   : > { %v3254_v42 = vpop.permute.xlu2 %778  ;;  %v3256_v43 = vpop.permute.xlu1 %686 }
  0xde   : > { %v3258_v37 = vpop.permute.xlu0 %684 }
  0xe3   : > { %922 = vrot.lane.b32.xlu2 %v3051_v52, %s2872_s22  ;;  %920 = vrot.lane.b32.xlu1 %v3054_v53, %s2872_s22 }
  0xe4   : > { %918 = vrot.lane.b32.xlu0 %v3027_v45, %s2872_s22 }
  0xe5   : > { %v3266_v46 = vpop.permute.xlu2 %784  ;;  %v3268_v47 = vpop.permute.xlu1 %764 }
  0xe6   : > { %v3270_v41 = vpop.permute.xlu0 %762 }
  0xeb   : > { %928 = vrot.lane.b32.xlu2 %v3072_v58, %s2872_s22  ;;  %926 = vrot.lane.b32.xlu1 %v3075_v59, %s2872_s22 }
  0xec   : > { %924 = vrot.lane.b32.xlu0 %v3048_v51, %s2872_s22 }
  0xed   : > { %v3278_v52 = vpop.permute.xlu2 %790  ;;  %v3280_v53 = vpop.permute.xlu1 %770 }
  0xee   : > { %4845 = vst [vmem:[#allocation29_spill] sm:$0xff] %v3278_v52  ;;  %v3282_v45 = vpop.permute.xlu0 %768  ;;  %v3693_v52 = vld [vmem:[%s2922_s19 + $0xd4] sm:$0xff] }
  0xef   : > { %4846 = vst [vmem:[#allocation30_spill] sm:$0xff] %v3280_v53  ;;  %v3690_v53 = vld [vmem:[%s2922_s19 + $0xdc] sm:$0xff] }
  0xf0   : > { %4847 = vst [vmem:[#allocation31_spill] sm:$0xff] %v3282_v45  ;;  %v3687_v45 = vld [vmem:[%s2922_s19 + $0xe4] sm:$0xff] }
  0xf3   : > { %934 = vrot.lane.b32.xlu2 %v3093_v0, %s2872_s22  ;;  %932 = vrot.lane.b32.xlu1 %v3096_v1, %s2872_s22 }
  0xf4   : > { %930 = vrot.lane.b32.xlu0 %v3069_v57, %s2872_s22 }
  0xf5   : > { %v3290_v58 = vpop.permute.xlu2 %796  ;;  %v3292_v59 = vpop.permute.xlu1 %776 }
  0xf6   : > { %4848 = vst [vmem:[#allocation32_spill] sm:$0xff] %v3290_v58  ;;  %v3294_v51 = vpop.permute.xlu0 %774 }
  0xf7   : > { %4849 = vst [vmem:[#allocation33_spill] sm:$0xff] %v3292_v59 }
  0xf8   : > { %4850 = vst [vmem:[#allocation34_spill] sm:$0xff] %v3294_v51 }
  0xfb   : > { %940 = vrot.lane.b32.xlu2 %v3114_v6, %s2872_s22  ;;  %938 = vrot.lane.b32.xlu1 %v3117_v7, %s2872_s22 }
  0xfc   : > { %936 = vrot.lane.b32.xlu0 %v3090_v63, %s2872_s22 }
  0xfd   : > { %v3302_v0 = vpop.permute.xlu2 %802  ;;  %v3304_v1 = vpop.permute.xlu1 %782 }
  0xfe   : > { %4851 = vst [vmem:[#allocation35_spill] sm:$0xff] %v3302_v0  ;;  %v3306_v57 = vpop.permute.xlu0 %780  ;;  %v3588_v0 = vld [vmem:[%s2922_s19 + $0x5c] sm:$0xff] }
  0xff   : > { %4852 = vst [vmem:[#allocation36_spill] sm:$0xff] %v3304_v1  ;;  %v3585_v1 = vld [vmem:[%s2922_s19 + $0x64] sm:$0xff] }
 0x100   : > { %4853 = vst [vmem:[#allocation37_spill] sm:$0xff] %v3306_v57  ;;  %v3582_v57 = vld [vmem:[%s2922_s19 + $0x6c] sm:$0xff] }
 0x103   : > { %946 = vrot.lane.b32.xlu2 %v3135_v12, %s2872_s22  ;;  %944 = vrot.lane.b32.xlu1 %v3138_v13, %s2872_s22 }
 0x104   : > { %942 = vrot.lane.b32.xlu0 %v3111_v5, %s2872_s22 }
 0x105   : > { %v3314_v6 = vpop.permute.xlu2 %808  ;;  %v3316_v7 = vpop.permute.xlu1 %788 }
 0x106   : > { %4854 = vst [vmem:[#allocation38_spill] sm:$0xff] %v3314_v6  ;;  %v3318_v63 = vpop.permute.xlu0 %786  ;;  %v2613_v6 = vld [vmem:[%s2922_s19 + $0x14] sm:$0xff] }
 0x107   : > { %4855 = vst [vmem:[#allocation39_spill] sm:$0xff] %v3316_v7  ;;  %v2598_v7 = vld [vmem:[%s2922_s19 + $0xbb] sm:$0xff] }
 0x108   : > { %4856 = vst [vmem:[#allocation40_spill] sm:$0xff] %v3318_v63  ;;  %v2599_v63 = vld [vmem:[%s2922_s19 + $0xc3] sm:$0xff] }
 0x10b   : > { %952 = vrot.lane.b32.xlu2 %v3156_v18, %s2872_s22  ;;  %950 = vrot.lane.b32.xlu1 %v3159_v19, %s2872_s22 }
 0x10c   : > { %948 = vrot.lane.b32.xlu0 %v3132_v11, %s2872_s22 }
 0x10d   : > { %v3326_v12 = vpop.permute.xlu2 %814  ;;  %v3328_v13 = vpop.permute.xlu1 %794 }
 0x10e   : > { %4857 = vst [vmem:[#allocation41_spill] sm:$0xff] %v3326_v12  ;;  %v3330_v5 = vpop.permute.xlu0 %792  ;;  %v2597_v12 = vld [vmem:[%s2922_s19 + $0xb3] sm:$0xff] }
 0x10f   : > { %4858 = vst [vmem:[#allocation42_spill] sm:$0xff] %v3328_v13  ;;  %v2592_v13 = vld [vmem:[%s2922_s19 + $0x8b] sm:$0xff] }
 0x110   : > { %4859 = vst [vmem:[#allocation43_spill] sm:$0xff] %v3330_v5  ;;  %v2593_v5 = vld [vmem:[%s2922_s19 + $0x93] sm:$0xff] }
 0x113   : > { %958 = vrot.lane.b32.xlu2 %v3177_v24, %s2872_s22  ;;  %956 = vrot.lane.b32.xlu1 %v3180_v25, %s2872_s22 }
 0x114   : > { %954 = vrot.lane.b32.xlu0 %v3153_v17, %s2872_s22 }
 0x115   : > { %v3338_v18 = vpop.permute.xlu2 %820  ;;  %v3340_v11 = vpop.permute.xlu1 %800 }
 0x116   : > { %4860 = vst [vmem:[#allocation44_spill] sm:$0xff] %v3338_v18  ;;  %v3342_v19 = vpop.permute.xlu0 %798  ;;  %v2578_v18 = vld [vmem:[%s2922_s19 + $0x1b] sm:$0xff] }
 0x117   : > { %4861 = vst [vmem:[#allocation45_spill] sm:$0xff] %v3340_v11  ;;  %v2577_v11 = vld [vmem:[%s2922_s19 + $0x13] sm:$0xff] }
 0x118   : > { %4862 = vst [vmem:[#allocation46_spill] sm:$0xff] %v3342_v19  ;;  %v2588_v19 = vld [vmem:[%s2922_s19 + $0x6b] sm:$0xff] }
 0x11b   : > { %964 = vrot.lane.b32.xlu2 %v3198_v30, %s2872_s22  ;;  %962 = vrot.lane.b32.xlu1 %v3201_v31, %s2872_s22 }
 0x11c   : > { %960 = vrot.lane.b32.xlu0 %v3174_v23, %s2872_s22 }
 0x11d   : > { %v3350_v24 = vpop.permute.xlu2 %826  ;;  %v3352_v17 = vpop.permute.xlu1 %806 }
 0x11e   : > { %4863 = vst [vmem:[#allocation47_spill] sm:$0xff] %v3350_v24  ;;  %v3354_v25 = vpop.permute.xlu0 %804  ;;  %v2576_v24 = vld [vmem:[%s2922_s19 + $0x12a] sm:$0xff] }
 0x11f   : > { %4864 = vst [vmem:[#allocation48_spill] sm:$0xff] %v3352_v17  ;;  %v2590_v17 = vld [vmem:[%s2922_s19 + $0x7b] sm:$0xff] }
 0x120   : > { %4865 = vst [vmem:[#allocation49_spill] sm:$0xff] %v3354_v25  ;;  %v2591_v25 = vld [vmem:[%s2922_s19 + $0x83] sm:$0xff] }
 0x123   : > { %970 = vrot.lane.b32.xlu2 %v3219_v38, %s2872_s22  ;;  %968 = vrot.lane.b32.xlu1 %v3222_v39, %s2872_s22 }
 0x124   : > { %966 = vrot.lane.b32.xlu0 %v3195_v29, %s2872_s22 }
 0x125   : > { %v3362_v30 = vpop.permute.xlu2 %832  ;;  %v3364_v23 = vpop.permute.xlu1 %812 }
 0x126   : > { %4866 = vst [vmem:[#allocation50_spill] sm:$0xff] %v3364_v23  ;;  %v3366_v31 = vpop.permute.xlu0 %810  ;;  %v2586_v23 = vld [vmem:[%s2922_s19 + $0x5b] sm:$0xff] }
 0x127   : > { %4867 = vst [vmem:[#allocation51_spill] sm:$0xff] %v3366_v31  ;;  %v2587_v31 = vld [vmem:[%s2922_s19 + $0x63] sm:$0xff] }
 0x12b   : > { %976 = vrot.lane.b32.xlu2 %v2576_v24, %s2872_s22  ;;  %974 = vrot.lane.b32.xlu1 %v2575_v34, %s2872_s22 }
 0x12c   : > { %972 = vrot.lane.b32.xlu0 %v3216_v35, %s2872_s22 }
 0x12d   : > { %v3374_v38 = vpop.permute.xlu2 %910  ;;  %v3376_v29 = vpop.permute.xlu1 %818 }
 0x12e   : > { %4868 = vst [vmem:[#allocation52_spill] sm:$0xff] %v3376_v29  ;;  %v3378_v39 = vpop.permute.xlu0 %816  ;;  %v2582_v29 = vld [vmem:[%s2922_s19 + $0x3b] sm:$0xff] }
 0x12f   : > { %4869 = vst [vmem:[#allocation53_spill] sm:$0xff] %v3378_v39  ;;  %v2580_v39 = vld [vmem:[%s2922_s19 + $0x2b] sm:$0xff] }
 0x133   : > { %1054 = vrot.lane.b32.xlu2 %v2579_v33, %s2873_s23  ;;  %1052 = vrot.lane.b32.xlu1 %v2578_v18, %s2873_s23 }
 0x134   : > { %1050 = vrot.lane.b32.xlu0 %v2577_v11, %s2873_s23 }
 0x135   : > { %v3386_v34 = vpop.permute.xlu2 %916  ;;  %v3388_v35 = vpop.permute.xlu1 %824 }
 0x136   : > { %4870 = vst [vmem:[#allocation54_spill] sm:$0xff] %v3388_v35  ;;  %v3390_v24 = vpop.permute.xlu0 %822  ;;  %v2585_v35 = vld [vmem:[%s2922_s19 + $0x53] sm:$0xff] }
 0x137   : > { %4871 = vst [vmem:[#allocation55_spill] sm:$0xff] %v3390_v24  ;;  %v2584_v24 = vld [vmem:[%s2922_s19 + $0x4b] sm:$0xff] }
 0x13b   : > { %1060 = vrot.lane.b32.xlu2 %v2582_v29, %s2873_s23  ;;  %1058 = vrot.lane.b32.xlu1 %v2581_v20, %s2873_s23 }
 0x13c   : > { %1056 = vrot.lane.b32.xlu0 %v2580_v39, %s2873_s23 }
 0x13d   : > { %v3398_v33 = vpop.permute.xlu2 %922  ;;  %v3400_v18 = vpop.permute.xlu1 %830 }
 0x13e   : > { %v3402_v11 = vpop.permute.xlu0 %828 }
 0x143   : > { %1066 = vrot.lane.b32.xlu2 %v2585_v35, %s2873_s23  ;;  %1064 = vrot.lane.b32.xlu1 %v2584_v24, %s2873_s23 }
 0x144   : > { %1062 = vrot.lane.b32.xlu0 %v2583_v21, %s2873_s23 }
 0x145   : > { %v3410_v20 = vpop.permute.xlu2 %928  ;;  %v3412_v29 = vpop.permute.xlu1 %908 }
 0x146   : > { %4872 = vst [vmem:[#allocation56_spill] sm:$0xff] %v3410_v20  ;;  %v3414_v39 = vpop.permute.xlu0 %906  ;;  %v3756_v20 = vld [vmem:[%s2922_s19 + $0x11c] sm:$0xff] }
 0x147   : > { %4873 = vst [vmem:[#allocation57_spill] sm:$0xff] %v3412_v29  ;;  %v3753_v29 = vld [vmem:[%s2922_s19 + $0x124] sm:$0xff] }
 0x148   : > { %4874 = vst [vmem:[#allocation58_spill] sm:$0xff] %v3414_v39  ;;  %v3750_v39 = vld [vmem:[%s2922_s19 + $0x12c] sm:$0xff] }
 0x149   : > { %4929 = vst [vmem:[#allocation113_spill] sm:$0xff] %v3750_v39 }
 0x14a   : > { %4930 = vst [vmem:[#allocation114_spill] sm:$0xff] %v3753_v29 }
 0x14b   : > { %1072 = vrot.lane.b32.xlu2 %v2588_v19, %s2873_s23  ;;  %1070 = vrot.lane.b32.xlu1 %v2587_v31, %s2873_s23  ;;  %4931 = vst [vmem:[#allocation115_spill] sm:$0xff] %v3756_v20 }
 0x14c   : > { %1068 = vrot.lane.b32.xlu0 %v2586_v23, %s2873_s23 }
 0x14d   : > { %v3422_v35 = vpop.permute.xlu2 %934  ;;  %v3424_v21 = vpop.permute.xlu1 %914 }
 0x14e   : > { %4875 = vst [vmem:[#allocation59_spill] sm:$0xff] %v3422_v35  ;;  %v3426_v24 = vpop.permute.xlu0 %912  ;;  %v3672_v35 = vld [vmem:[%s2922_s19 + $0xbc] sm:$0xff] }
 0x14f   : > { %4876 = vst [vmem:[#allocation60_spill] sm:$0xff] %v3424_v21  ;;  %v3669_v21 = vld [vmem:[%s2922_s19 + $0xc4] sm:$0xff] }
 0x150   : > { %4877 = vst [vmem:[#allocation61_spill] sm:$0xff] %v3426_v24  ;;  %v3666_v24 = vld [vmem:[%s2922_s19 + $0xcc] sm:$0xff] }
 0x153   : > { %1078 = vrot.lane.b32.xlu2 %v2591_v25, %s2873_s23  ;;  %1076 = vrot.lane.b32.xlu1 %v2590_v17, %s2873_s23 }
 0x154   : > { %1074 = vrot.lane.b32.xlu0 %v2589_v28, %s2873_s23 }
 0x155   : > { %v3434_v19 = vpop.permute.xlu2 %940  ;;  %v3436_v23 = vpop.permute.xlu1 %920 }
 0x156   : > { %4878 = vst [vmem:[#allocation62_spill] sm:$0xff] %v3434_v19  ;;  %v3438_v31 = vpop.permute.xlu0 %918  ;;  %v3609_v19 = vld [vmem:[%s2922_s19 + $0x74] sm:$0xff] }
 0x157   : > { %4879 = vst [vmem:[#allocation63_spill] sm:$0xff] %v3436_v23  ;;  %v3606_v23 = vld [vmem:[%s2922_s19 + $0x7c] sm:$0xff] }
 0x158   : > { %4880 = vst [vmem:[#allocation64_spill] sm:$0xff] %v3438_v31  ;;  %v3603_v31 = vld [vmem:[%s2922_s19 + $0x84] sm:$0xff] }
 0x15b   : > { %1084 = vrot.lane.b32.xlu2 %v2594_v27, %s2873_s23  ;;  %1082 = vrot.lane.b32.xlu1 %v2593_v5, %s2873_s23 }
 0x15c   : > { %1080 = vrot.lane.b32.xlu0 %v2592_v13, %s2873_s23 }
 0x15d   : > { %v3446_v17 = vpop.permute.xlu2 %946  ;;  %v3448_v28 = vpop.permute.xlu1 %926 }
 0x15e   : > { %4881 = vst [vmem:[#allocation65_spill] sm:$0xff] %v3446_v17  ;;  %v3450_v25 = vpop.permute.xlu0 %924 }
 0x15f   : > { %4882 = vst [vmem:[#allocation66_spill] sm:$0xff] %v3448_v28 }
 0x160   : > { %4883 = vst [vmem:[#allocation67_spill] sm:$0xff] %v3450_v25 }
 0x163   : > { %1090 = vrot.lane.b32.xlu2 %v2597_v12, %s2873_s23  ;;  %1088 = vrot.lane.b32.xlu1 %v2596_v16, %s2873_s23 }
 0x164   : > { %1086 = vrot.lane.b32.xlu0 %v2595_v15, %s2873_s23 }
 0x165   : > { %v3458_v27 = vpop.permute.xlu2 %952  ;;  %v3460_v13 = vpop.permute.xlu1 %932 }
 0x166   : > { %4884 = vst [vmem:[#allocation68_spill] sm:$0xff] %v3458_v27  ;;  %v3462_v5 = vpop.permute.xlu0 %930  ;;  %v2601_v27 = vld [vmem:[%s2922_s19 + $0xd3] sm:$0xff] }
 0x167   : > { %4885 = vst [vmem:[#allocation69_spill] sm:$0xff] %v3460_v13  ;;  %v2603_v13 = vld [vmem:[%s2922_s19 + $0xe3] sm:$0xff] }
 0x168   : > { %4886 = vst [vmem:[#allocation70_spill] sm:$0xff] %v3462_v5  ;;  %v2602_v5 = vld [vmem:[%s2922_s19 + $0xdb] sm:$0xff] }
 0x16b   : > { %1096 = vrot.lane.b32.xlu2 %v2600_v14, %s2873_s23  ;;  %1094 = vrot.lane.b32.xlu1 %v2599_v63, %s2873_s23 }
 0x16c   : > { %1092 = vrot.lane.b32.xlu0 %v2598_v7, %s2873_s23 }
 0x16d   : > { %v3470_v16 = vpop.permute.xlu2 %958  ;;  %v3472_v15 = vpop.permute.xlu1 %938 }
 0x16e   : > { %4887 = vst [vmem:[#allocation71_spill] sm:$0xff] %v3470_v16  ;;  %v3474_v12 = vpop.permute.xlu0 %936  ;;  %v2604_v16 = vld [vmem:[%s2922_s19 + $0xeb] sm:$0xff] }
 0x16f   : > { %4888 = vst [vmem:[#allocation72_spill] sm:$0xff] %v3472_v15  ;;  %v2606_v15 = vld [vmem:[%s2922_s19 + $0xfb] sm:$0xff] }
 0x170   : > { %4889 = vst [vmem:[#allocation73_spill] sm:$0xff] %v3474_v12  ;;  %v2605_v12 = vld [vmem:[%s2922_s19 + $0xf3] sm:$0xff] }
 0x173   : > { %1102 = vrot.lane.b32.xlu2 %v2603_v13, %s2873_s23  ;;  %1100 = vrot.lane.b32.xlu1 %v2602_v5, %s2873_s23 }
 0x174   : > { %1098 = vrot.lane.b32.xlu0 %v2601_v27, %s2873_s23 }
 0x175   : > { %v3482_v14 = vpop.permute.xlu2 %964  ;;  %v3484_v7 = vpop.permute.xlu1 %944 }
 0x176   : > { %4890 = vst [vmem:[#allocation74_spill] sm:$0xff] %v3482_v14  ;;  %v3486_v63 = vpop.permute.xlu0 %942  ;;  %v2609_v14 = vld [vmem:[%s2922_s19 + $0x113] sm:$0xff] }
 0x177   : > { %4891 = vst [vmem:[#allocation75_spill] sm:$0xff] %v3484_v7  ;;  %v2608_v7 = vld [vmem:[%s2922_s19 + $0x10b] sm:$0xff] }
 0x178   : > { %4892 = vst [vmem:[#allocation76_spill] sm:$0xff] %v3486_v63  ;;  %v2607_v63 = vld [vmem:[%s2922_s19 + $0x103] sm:$0xff] }
 0x17b   : > { %1108 = vrot.lane.b32.xlu2 %v2606_v15, %s2873_s23  ;;  %1106 = vrot.lane.b32.xlu1 %v2605_v12, %s2873_s23 }
 0x17c   : > { %1104 = vrot.lane.b32.xlu0 %v2604_v16, %s2873_s23 }
 0x17d   : > { %v3494_v13 = vpop.permute.xlu2 %970  ;;  %v3496_v27 = vpop.permute.xlu1 %950 }
 0x17e   : > { %4893 = vst [vmem:[#allocation77_spill] sm:$0xff] %v3494_v13  ;;  %v3498_v5 = vpop.permute.xlu0 %948  ;;  %v2612_v13 = vld [vmem:[%s2922_s19 + $0x12b] sm:$0xff] }
 0x17f   : > { %4894 = vst [vmem:[#allocation78_spill] sm:$0xff] %v3496_v27  ;;  %v2610_v27 = vld [vmem:[%s2922_s19 + $0x11b] sm:$0xff] }
 0x180   : > { %4895 = vst [vmem:[#allocation79_spill] sm:$0xff] %v3498_v5  ;;  %v2611_v5 = vld [vmem:[%s2922_s19 + $0x123] sm:$0xff] }
 0x183   : > { %1114 = vrot.lane.b32.xlu2 %v2609_v14, %s2873_s23  ;;  %1112 = vrot.lane.b32.xlu1 %v2608_v7, %s2873_s23 }
 0x184   : > { %1110 = vrot.lane.b32.xlu0 %v2607_v63, %s2873_s23 }
 0x185   : > { %v3506_v15 = vpop.permute.xlu2 %976  ;;  %v3508_v16 = vpop.permute.xlu1 %956 }
 0x186   : > { %4896 = vst [vmem:[#allocation80_spill] sm:$0xff] %v3508_v16  ;;  %v3510_v12 = vpop.permute.xlu0 %954  ;;  %v3525_v16 = vld [vmem:[%s2922_s19 + $0x24] sm:$0xff] }
 0x187   : > { %4897 = vst [vmem:[#allocation81_spill] sm:$0xff] %v3510_v12  ;;  %v2614_v12 = vld [vmem:[%s2922_s19 + $0x1c] sm:$0xff] }
 0x18b   : > { %1120 = vrot.lane.b32.xlu2 %v2612_v13, %s2873_s23  ;;  %1118 = vrot.lane.b32.xlu1 %v2611_v5, %s2873_s23 }
 0x18c   : > { %1116 = vrot.lane.b32.xlu0 %v2610_v27, %s2873_s23 }
 0x18d   : > { %v3518_v14 = vpop.permute.xlu2 %1054  ;;  %v3520_v7 = vpop.permute.xlu1 %962 }
 0x18e   : > { %4898 = vst [vmem:[#allocation82_spill] sm:$0xff] %v3520_v7  ;;  %v3522_v63 = vpop.permute.xlu0 %960  ;;  %v3540_v7 = vld [vmem:[%s2922_s19 + $0x3c] sm:$0xff] }
 0x18f   : > { %4899 = vst [vmem:[#allocation83_spill] sm:$0xff] %v3522_v63  ;;  %v3543_v63 = vld [vmem:[%s2922_s19 + $0x34] sm:$0xff] }
 0x193   : > { %1198 = vrot.lane.b32.xlu2 %v3525_v16, %s2874_s24  ;;  %1196 = vrot.lane.b32.xlu1 %v2614_v12, %s2874_s24 }
 0x194   : > { %1194 = vrot.lane.b32.xlu0 %v2613_v6, %s2874_s24 }
 0x195   : > { %v3533_v13 = vpop.permute.xlu2 %1060  ;;  %v3535_v27 = vpop.permute.xlu1 %968 }
 0x196   : > { %4900 = vst [vmem:[#allocation84_spill] sm:$0xff] %v3535_v27  ;;  %v3537_v5 = vpop.permute.xlu0 %966 }
 0x197   : > { %4901 = vst [vmem:[#allocation85_spill] sm:$0xff] %v3537_v5  ;;  %v3561_v5 = vld [vmem:[%s2922_s19 + $0x54] sm:$0xff] }
 0x19b   : > { %1204 = vrot.lane.b32.xlu2 %v3540_v7, %s2874_s24  ;;  %1202 = vrot.lane.b32.xlu1 %v3543_v63, %s2874_s24 }
 0x19c   : > { %1200 = vrot.lane.b32.xlu0 %v3546_v10, %s2874_s24 }
 0x19d   : > { %v3554_v6 = vpop.permute.xlu2 %1066  ;;  %v3556_v12 = vpop.permute.xlu1 %974 }
 0x19e   : > { %v3558_v27 = vpop.permute.xlu0 %972 }
 0x1a3   : > { %1210 = vrot.lane.b32.xlu2 %v3561_v5, %s2874_s24  ;;  %1208 = vrot.lane.b32.xlu1 %v3564_v9, %s2874_s24 }
 0x1a4   : > { %1206 = vrot.lane.b32.xlu0 %v3567_v8, %s2874_s24 }
 0x1a5   : > { %v3575_v25 = vpop.permute.xlu2 %1072  ;;  %v3577_v28 = vpop.permute.xlu1 %1052 }
 0x1a6   : > { %4902 = vst [vmem:[#allocation86_spill] sm:$0xff] %v3575_v25  ;;  %v3579_v17 = vpop.permute.xlu0 %1050  ;;  %v3735_v25 = vld [vmem:[%s2922_s19 + $0x104] sm:$0xff] }
 0x1a7   : > { %4903 = vst [vmem:[#allocation87_spill] sm:$0xff] %v3577_v28  ;;  %v3732_v28 = vld [vmem:[%s2922_s19 + $0x10c] sm:$0xff] }
 0x1a8   : > { %4904 = vst [vmem:[#allocation88_spill] sm:$0xff] %v3579_v17  ;;  %v3729_v17 = vld [vmem:[%s2922_s19 + $0x114] sm:$0xff] }
 0x1a9   : > { %4926 = vst [vmem:[#allocation110_spill] sm:$0xff] %v3729_v17 }
 0x1ab   : > { %1216 = vrot.lane.b32.xlu2 %v3582_v57, %s2874_s24  ;;  %1214 = vrot.lane.b32.xlu1 %v3585_v1, %s2874_s24 }
 0x1ac   : > { %1212 = vrot.lane.b32.xlu0 %v3588_v0, %s2874_s24 }
 0x1ad   : > { %v3596_v4 = vpop.permute.xlu2 %1078  ;;  %v3598_v3 = vpop.permute.xlu1 %1058 }
 0x1ae   : > { %4905 = vst [vmem:[#allocation89_spill] sm:$0xff] %v3596_v4  ;;  %v3600_v2 = vpop.permute.xlu0 %1056  ;;  %v3651_v4 = vld [vmem:[%s2922_s19 + $0xa4] sm:$0xff] }
 0x1af   : > { %4906 = vst [vmem:[#allocation90_spill] sm:$0xff] %v3598_v3  ;;  %v3648_v3 = vld [vmem:[%s2922_s19 + $0xac] sm:$0xff] }
 0x1b0   : > { %4907 = vst [vmem:[#allocation91_spill] sm:$0xff] %v3600_v2  ;;  %v3645_v2 = vld [vmem:[%s2922_s19 + $0xb4] sm:$0xff] }
 0x1b3   : > { %1222 = vrot.lane.b32.xlu2 %v3603_v31, %s2874_s24  ;;  %1220 = vrot.lane.b32.xlu1 %v3606_v23, %s2874_s24 }
 0x1b4   : > { %1218 = vrot.lane.b32.xlu0 %v3609_v19, %s2874_s24 }
 0x1b5   : > { %v3617_v51 = vpop.permute.xlu2 %1084  ;;  %v3619_v59 = vpop.permute.xlu1 %1064 }
 0x1b6   : > { %4908 = vst [vmem:[#allocation92_spill] sm:$0xff] %v3617_v51  ;;  %v3621_v58 = vpop.permute.xlu0 %1062 }
 0x1b7   : > { %4909 = vst [vmem:[#allocation93_spill] sm:$0xff] %v3619_v59 }
 0x1b8   : > { %4910 = vst [vmem:[#allocation94_spill] sm:$0xff] %v3621_v58 }
 0x1bb   : > { %1228 = vrot.lane.b32.xlu2 %v3624_v62, %s2874_s24  ;;  %1226 = vrot.lane.b32.xlu1 %v3627_v61, %s2874_s24 }
 0x1bc   : > { %1224 = vrot.lane.b32.xlu0 %v3630_v60, %s2874_s24 }
 0x1bd   : > { %v3638_v59 = vpop.permute.xlu2 %1090  ;;  %v3640_v58 = vpop.permute.xlu1 %1070 }
 0x1be   : > { %4911 = vst [vmem:[#allocation95_spill] sm:$0xff] %v3638_v59  ;;  %v3642_v51 = vpop.permute.xlu0 %1068 }
 0x1bf   : > { %4912 = vst [vmem:[#allocation96_spill] sm:$0xff] %v3640_v58 }
 0x1c0   : > { %4913 = vst [vmem:[#allocation97_spill] sm:$0xff] %v3642_v51 }
 0x1c3   : > { %1234 = vrot.lane.b32.xlu2 %v3645_v2, %s2874_s24  ;;  %1232 = vrot.lane.b32.xlu1 %v3648_v3, %s2874_s24 }
 0x1c4   : > { %1230 = vrot.lane.b32.xlu0 %v3651_v4, %s2874_s24 }
 0x1c5   : > { %v3659_v58 = vpop.permute.xlu2 %1096  ;;  %v3661_v51 = vpop.permute.xlu1 %1076 }
 0x1c6   : > { %4914 = vst [vmem:[#allocation98_spill] sm:$0xff] %v3659_v58  ;;  %v3663_v59 = vpop.permute.xlu0 %1074 }
 0x1c7   : > { %4915 = vst [vmem:[#allocation99_spill] sm:$0xff] %v3661_v51 }
 0x1c8   : > { %4916 = vst [vmem:[#allocation100_spill] sm:$0xff] %v3663_v59 }
 0x1cb   : > { %1240 = vrot.lane.b32.xlu2 %v3666_v24, %s2874_s24  ;;  %1238 = vrot.lane.b32.xlu1 %v3669_v21, %s2874_s24 }
 0x1cc   : > { %1236 = vrot.lane.b32.xlu0 %v3672_v35, %s2874_s24 }
 0x1cd   : > { %v3680_v51 = vpop.permute.xlu2 %1102  ;;  %v3682_v59 = vpop.permute.xlu1 %1082 }
 0x1ce   : > { %4917 = vst [vmem:[#allocation101_spill] sm:$0xff] %v3680_v51  ;;  %v3684_v58 = vpop.permute.xlu0 %1080 }
 0x1cf   : > { %4918 = vst [vmem:[#allocation102_spill] sm:$0xff] %v3682_v59 }
 0x1d0   : > { %4919 = vst [vmem:[#allocation103_spill] sm:$0xff] %v3684_v58 }
 0x1d3   : > { %1246 = vrot.lane.b32.xlu2 %v3687_v45, %s2874_s24  ;;  %1244 = vrot.lane.b32.xlu1 %v3690_v53, %s2874_s24 }
 0x1d4   : > { %1242 = vrot.lane.b32.xlu0 %v3693_v52, %s2874_s24 }
 0x1d5   : > { %v3701_v59 = vpop.permute.xlu2 %1108  ;;  %v3703_v58 = vpop.permute.xlu1 %1088 }
 0x1d6   : > { %4920 = vst [vmem:[#allocation104_spill] sm:$0xff] %v3701_v59  ;;  %v3705_v51 = vpop.permute.xlu0 %1086 }
 0x1d7   : > { %4921 = vst [vmem:[#allocation105_spill] sm:$0xff] %v3703_v58 }
 0x1d8   : > { %4922 = vst [vmem:[#allocation106_spill] sm:$0xff] %v3705_v51 }
 0x1db   : > { %1252 = vrot.lane.b32.xlu2 %v3708_v55, %s2874_s24  ;;  %1250 = vrot.lane.b32.xlu1 %v3711_v54, %s2874_s24 }
 0x1dc   : > { %1248 = vrot.lane.b32.xlu0 %v3714_v36, %s2874_s24 }
 0x1dd   : > { %v3722_v59 = vpop.permute.xlu2 %1114  ;;  %v3724_v58 = vpop.permute.xlu1 %1094 }
 0x1de   : > { %4923 = vst [vmem:[#allocation107_spill] sm:$0xff] %v3722_v59  ;;  %v3726_v51 = vpop.permute.xlu0 %1092 }
 0x1df   : > { %4924 = vst [vmem:[#allocation108_spill] sm:$0xff] %v3724_v58 }
 0x1e0   : > { %4925 = vst [vmem:[#allocation109_spill] sm:$0xff] %v3726_v51 }
 0x1e3   : > { %1258 = vrot.lane.b32.xlu2 %v3729_v17, %s2874_s24  ;;  %1256 = vrot.lane.b32.xlu1 %v3732_v28, %s2874_s24 }
 0x1e4   : > { %1254 = vrot.lane.b32.xlu0 %v3735_v25, %s2874_s24 }
 0x1e5   : > { %v3743_v59 = vpop.permute.xlu2 %1120  ;;  %v3745_v58 = vpop.permute.xlu1 %1100 }
 0x1e6   : > { %4927 = vst [vmem:[#allocation111_spill] sm:$0xff] %v3745_v58  ;;  %v3747_v51 = vpop.permute.xlu0 %1098 }
 0x1e7   : > { %4928 = vst [vmem:[#allocation112_spill] sm:$0xff] %v3747_v51 }
 0x1eb   : > { %1264 = vrot.lane.b32.xlu2 %v3750_v39, %s2874_s24  ;;  %1262 = vrot.lane.b32.xlu1 %v3753_v29, %s2874_s24 }
 0x1ec   : > { %1260 = vrot.lane.b32.xlu0 %v3756_v20, %s2874_s24 }
 0x1ed   : > { %v3764_v17 = vpop.permute.xlu2 %1198  ;;  %v3766_v58 = vpop.permute.xlu1 %1106 }
 0x1ee   : > { %4932 = vst [vmem:[#allocation116_spill] sm:$0xff] %v3766_v58  ;;  %v3768_v51 = vpop.permute.xlu0 %1104  ;;  %v2712_v58 = vld [vmem:[%s2922_s19 + $0xfd] sm:$0xff] }
 0x1ef   : > { %4933 = vst [vmem:[#allocation117_spill] sm:$0xff] %v3768_v51  ;;  %v2694_v51 = vld [vmem:[%s2922_s19 + $0x6d] sm:$0xff] }
 0x1f3   : > { %1342 = vrot.lane.b32.xlu2 %v3543_v63, %s2875_s25  ;;  %1340 = vrot.lane.b32.xlu1 %v3546_v10, %s2875_s25 }
 0x1f4   : > { %1338 = vrot.lane.b32.xlu0 %v3525_v16, %s2875_s25 }
 0x1f5   : > { %v3776_v39 = vpop.permute.xlu2 %1204  ;;  %v3778_v29 = vpop.permute.xlu1 %1112 }
 0x1f6   : > { %4934 = vst [vmem:[#allocation118_spill] sm:$0xff] %v3778_v29  ;;  %v3780_v20 = vpop.permute.xlu0 %1110  ;;  %v2703_v29 = vld [vmem:[%s2922_s19 + $0xb5] sm:$0xff] }
 0x1f7   : > { %4935 = vst [vmem:[#allocation119_spill] sm:$0xff] %v3780_v20  ;;  %v277_v20 = vld [vmem:[%s2922_s19 + $0x118] sm:$0xff] }
 0x1fb   : > { %1348 = vrot.lane.b32.xlu2 %v3564_v9, %s2875_s25  ;;  %1346 = vrot.lane.b32.xlu1 %v3567_v8, %s2875_s25 }
 0x1fc   : > { %1344 = vrot.lane.b32.xlu0 %v3540_v7, %s2875_s25 }
 0x1fd   : > { %v3788_v63 = vpop.permute.xlu2 %1210  ;;  %v3790_v10 = vpop.permute.xlu1 %1118 }
 0x1fe   : > { %v3792_v16 = vpop.permute.xlu0 %1116 }
 0x203   : > { %1354 = vrot.lane.b32.xlu2 %v3585_v1, %s2875_s25  ;;  %1352 = vrot.lane.b32.xlu1 %v3588_v0, %s2875_s25 }
 0x204   : > { %1350 = vrot.lane.b32.xlu0 %v3561_v5, %s2875_s25 }
 0x205   : > { %v3800_v9 = vpop.permute.xlu2 %1216  ;;  %v3802_v8 = vpop.permute.xlu1 %1196 }
 0x206   : > { %v3804_v7 = vpop.permute.xlu0 %1194 }
 0x20b   : > { %1360 = vrot.lane.b32.xlu2 %v3606_v23, %s2875_s25  ;;  %1358 = vrot.lane.b32.xlu1 %v3609_v19, %s2875_s25 }
 0x20c   : > { %1356 = vrot.lane.b32.xlu0 %v3582_v57, %s2875_s25 }
 0x20d   : > { %v3812_v1 = vpop.permute.xlu2 %1222  ;;  %v3814_v0 = vpop.permute.xlu1 %1202 }
 0x20e   : > { %v3816_v5 = vpop.permute.xlu0 %1200 }
 0x213   : > { %1366 = vrot.lane.b32.xlu2 %v3627_v61, %s2875_s25  ;;  %1364 = vrot.lane.b32.xlu1 %v3630_v60, %s2875_s25 }
 0x214   : > { %1362 = vrot.lane.b32.xlu0 %v3603_v31, %s2875_s25 }
 0x215   : > { %v3824_v23 = vpop.permute.xlu2 %1228  ;;  %v3826_v19 = vpop.permute.xlu1 %1208 }
 0x216   : > { %v3828_v57 = vpop.permute.xlu0 %1206 }
 0x21b   : > { %1372 = vrot.lane.b32.xlu2 %v3648_v3, %s2875_s25  ;;  %1370 = vrot.lane.b32.xlu1 %v3651_v4, %s2875_s25 }
 0x21c   : > { %1368 = vrot.lane.b32.xlu0 %v3624_v62, %s2875_s25 }
 0x21d   : > { %v3836_v61 = vpop.permute.xlu2 %1234  ;;  %v3838_v60 = vpop.permute.xlu1 %1214 }
 0x21e   : > { %v3840_v31 = vpop.permute.xlu0 %1212 }
 0x223   : > { %1378 = vrot.lane.b32.xlu2 %v3669_v21, %s2875_s25  ;;  %1376 = vrot.lane.b32.xlu1 %v3672_v35, %s2875_s25 }
 0x224   : > { %1374 = vrot.lane.b32.xlu0 %v3645_v2, %s2875_s25 }
 0x225   : > { %v3848_v3 = vpop.permute.xlu2 %1240  ;;  %v3850_v4 = vpop.permute.xlu1 %1220 }
 0x226   : > { %v3852_v62 = vpop.permute.xlu0 %1218 }
 0x22b   : > { %1384 = vrot.lane.b32.xlu2 %v3690_v53, %s2875_s25  ;;  %1382 = vrot.lane.b32.xlu1 %v3693_v52, %s2875_s25 }
 0x22c   : > { %1380 = vrot.lane.b32.xlu0 %v3666_v24, %s2875_s25 }
 0x22d   : > { %v3860_v35 = vpop.permute.xlu2 %1246  ;;  %v3862_v21 = vpop.permute.xlu1 %1226 }
 0x22e   : > { %v3864_v2 = vpop.permute.xlu0 %1224 }
 0x233   : > { %1390 = vrot.lane.b32.xlu2 %v3711_v54, %s2875_s25  ;;  %1388 = vrot.lane.b32.xlu1 %v3714_v36, %s2875_s25 }
 0x234   : > { %1386 = vrot.lane.b32.xlu0 %v3687_v45, %s2875_s25 }
 0x235   : > { %v3872_v52 = vpop.permute.xlu2 %1252  ;;  %v3874_v53 = vpop.permute.xlu1 %1232 }
 0x236   : > { %4936 = vst [vmem:[#allocation120_spill] sm:$0xff] %v3872_v52  ;;  %v3876_v24 = vpop.permute.xlu0 %1230  ;;  %v2748_v52 = vld [vmem:[%s2922_s19 + $0xfe] sm:$0xff] }
 0x237   : > { %4937 = vst [vmem:[#allocation121_spill] sm:$0xff] %v3874_v53  ;;  %v2739_v53 = vld [vmem:[%s2922_s19 + $0xb6] sm:$0xff] }
 0x23b   : > { %1518 = vrot.lane.b32.xlu2 %v2703_v29, %s2876_s26  ;;  %1394 = vrot.lane.b32.xlu1 %v3735_v25, %s2875_s25  ;;  %v1770_v29 = vsel %vm1734_vm0, %v277_v20, %v3209_v32 }
 0x23c   : > { %1392 = vrot.lane.b32.xlu0 %v3708_v55, %s2875_s25  ;;  %v1807_v55 = vsel %vm1771_vm1, %v1770_v29, %v3362_v30  ;;  %v244_v29 = vld [vmem:[%s2922_s19 + $0x10] sm:$0xff] }
 0x23d   : > { %v3884_v36 = vpop.permute.xlu2 %1258  ;;  %v3886_v54 = vpop.permute.xlu1 %1238  ;;  %v1844_v25 = vsel %vm1808_vm2, %v1807_v55, %v3506_v15  ;;  %v2685_v15 = vld [vmem:[%s2922_s19 + $0x25] sm:$0xff] }
 0x23e   : > { %4938 = vst [vmem:[#allocation122_spill] sm:$0xff] %v3884_v36  ;;  %v3888_v45 = vpop.permute.xlu0 %1236  ;;  %v1881_v32 = vsel %vm1845_vm3, %v1844_v25, %v3743_v59 }
 0x243   : > { %1680 = vrot.lane.b32.xlu2 %v2748_v52, %s2877_s27  ;;  %1662 = vrot.lane.b32.xlu1 %v2739_v53, %s2877_s27  ;;  %v2721_v53 = vld [vmem:[%s2922_s19 + $0x26] sm:$0xff] }
 0x244   : > { %1536 = vrot.lane.b32.xlu0 %v2712_v58, %s2876_s26  ;;  %v1737_v58 = vsel %vm1734_vm0, %v244_v29, %v3043_v49 }
 0x245   : > { %v1265_v20 = vpop.permute.xlu2 %1264  ;;  %v3905_v30 = vpop.permute.xlu1 %1244  ;;  %v1774_v59 = vsel %vm1771_vm1, %v1737_v58, %v3230_v26  ;;  %v247_v26 = vld [vmem:[%s2922_s19 + $0x28] sm:$0xff] }
 0x246   : > { %v3909_v36 = vsel %vm1882_vm4, %v1881_v32, %v1265_v20  ;;  %v3911_v52 = vpop.permute.xlu0 %1242  ;;  %v1811_v55 = vsel %vm1808_vm2, %v1774_v59, %v3374_v38  ;;  %v2730_v58 = vld [vmem:[%s2922_s19 + $0x6e] sm:$0xff] }
 0x247   : > { %v1848_v25 = vsel %vm1845_vm3, %v1811_v55, %v3518_v14  ;;  %v1740_v14 = vsel %vm1734_vm0, %v247_v26, %v3007_v40  ;;  %v275_v26 = vld [vmem:[%s2922_s19 + $0x108] sm:$0xff] }
 0x248   : > { %v1885_v49 = vsel %vm1882_vm4, %v1848_v25, %v3764_v17  ;;  %v1777_v17 = vsel %vm1771_vm1, %v1740_v14, %v3242_v22  ;;  %v250_v22 = vld [vmem:[%s2922_s19 + $0x40] sm:$0xff] }
 0x249   : > { %v2740_v14 = vld [vmem:[%s2922_s19 + $0xbe] sm:$0xff] }
 0x24b   : > { %1626 = vrot.lane.b32.xlu2 %v2721_v53, %s2877_s27  ;;  %1500 = vrot.lane.b32.xlu1 %v2694_v51, %s2876_s26  ;;  %v2713_v51 = vld [vmem:[%s2922_s19 + $0x105] sm:$0xff]  ;;  %v2704_v53 = vld [vmem:[%s2922_s19 + $0xbd] sm:$0xff] }
 0x24c   : > { %1482 = vrot.lane.b32.xlu0 %v2685_v15, %s2876_s26  ;;  %v1814_v15 = vsel %vm1808_vm2, %v1777_v17, %v3386_v34  ;;  %v1768_v17 = vsel %vm1734_vm0, %v275_v26, %v3258_v37  ;;  %v242_v26 = vld [vmem:[%s2922_s19] sm:$0xff] }
 0x24d   : > { %v1343_v32 = vpop.permute.xlu2 %1342  ;;  %v3929_v20 = vpop.permute.xlu1 %1250  ;;  %v1851_v59 = vsel %vm1845_vm3, %v1814_v15, %v3533_v13  ;;  %v1743_v13 = vsel %vm1734_vm0, %v250_v22, %v3024_v44  ;;  %v1805_v44 = vsel %vm1771_vm1, %v1768_v17, %v3402_v11  ;;  %v4939_v17 = vld [vmem:[#allocation56_spill] sm:$0xff] }
 0x24e   : > { %v3933_v38 = vsel %vm1919_vm5, %v1885_v49, %v1343_v32  ;;  %v3935_v29 = vpop.permute.xlu0 %1248  ;;  %v1888_v40 = vsel %vm1882_vm4, %v1851_v59, %v3776_v39  ;;  %v276_v32 = vld [vmem:[%s2922_s19 + $0x110] sm:$0xff]  ;;  %v1780_v39 = vsel %vm1771_vm1, %v1743_v13, %v3254_v42  ;;  %v1842_v37 = vsel %vm1808_vm2, %v1805_v44, %v3558_v27  ;;  %v4943_v44 = vld [vmem:[#allocation87_spill] sm:$0xff] }
 0x24f   : > { %v1817_v15 = vsel %vm1808_vm2, %v1780_v39, %v3398_v33  ;;  %v1879_v22 = vsel %vm1845_vm3, %v1842_v37, %v3792_v16  ;;  %v2695_v13 = vld [vmem:[%s2922_s19 + $0x75] sm:$0xff]  ;;  %v1735_v16 = vsel %vm1734_vm0, %v242_v26, %v3045_v50  ;;  %v4941_v50 = vld [vmem:[#allocation58_spill] sm:$0xff] }
 0x250   : > { %v1854_v42 = vsel %vm1845_vm3, %v1817_v15, %v3554_v6  ;;  %v243_v6 = vld [vmem:[%s2922_s19 + $0x8] sm:$0xff]  ;;  %v4940_v15 = vld [vmem:[#allocation57_spill] sm:$0xff] }
 0x251   : > { %v1891_v33 = vsel %vm1882_vm4, %v1854_v42, %v3788_v63  ;;  %v4944_v42 = vld [vmem:[#allocation88_spill] sm:$0xff]  ;;  %v245_v26 = vld [vmem:[%s2922_s19 + $0x18] sm:$0xff] }
 0x253   : > { %1538 = vrot.lane.b32.xlu2 %v2713_v51, %s2876_s26  ;;  %1520 = vrot.lane.b32.xlu1 %v2704_v53, %s2876_s26  ;;  %v2686_v51 = vld [vmem:[%s2922_s19 + $0x2d] sm:$0xff] }
 0x254   : > { %1644 = vrot.lane.b32.xlu0 %v2730_v58, %s2877_s27  ;;  %v2749_v53 = vld [vmem:[%s2922_s19 + $0x106] sm:$0xff]  ;;  %v1769_v58 = vsel %vm1734_vm0, %v276_v32, %v3256_v43 }
 0x255   : > { %v1349_v55 = vpop.permute.xlu2 %1348  ;;  %v3953_v25 = vpop.permute.xlu1 %1256  ;;  %v1806_v59 = vsel %vm1771_vm1, %v1769_v58, %v3400_v18  ;;  %v1772_v58 = vsel %vm1771_vm1, %v1735_v16, %v3270_v41 }
 0x256   : > { %v3957_v49 = vsel %vm1919_vm5, %v1888_v40, %v1349_v55  ;;  %v3959_v34 = vpop.permute.xlu0 %1254  ;;  %v1843_v43 = vsel %vm1808_vm2, %v1806_v59, %v3556_v12  ;;  %v253_v55 = vld [vmem:[%s2922_s19 + $0x58] sm:$0xff] }
 0x257   : > { %v1880_v18 = vsel %vm1845_vm3, %v1843_v43, %v3790_v10  ;;  %v1746_v10 = vsel %vm1734_vm0, %v253_v55, %v3041_v48 }
 0x25b   : > { %1484 = vrot.lane.b32.xlu2 %v2686_v51, %s2876_s26  ;;  %1682 = vrot.lane.b32.xlu1 %v2749_v53, %s2877_s27  ;;  %v2722_v51 = vld [vmem:[%s2922_s19 + $0x2e] sm:$0xff]  ;;  %v1736_v53 = vsel %vm1734_vm0, %v243_v6, %v3066_v56 }
 0x25c   : > { %1664 = vrot.lane.b32.xlu0 %v2740_v14, %s2877_s27  ;;  %v1783_v14 = vsel %vm1771_vm1, %v1746_v10, %v3266_v46  ;;  %v1773_v39 = vsel %vm1771_vm1, %v1736_v53, %v3268_v47  ;;  %v1809_v46 = vsel %vm1808_vm2, %v1772_v58, %v4941_v50  ;;  %v4942_v47 = vld [vmem:[#allocation86_spill] sm:$0xff]  ;;  %v4948_v58 = vld [vmem:[#allocation29_spill] sm:$0xff] }
 0x25d   : > { %v1355_v11 = vpop.permute.xlu2 %1354  ;;  %v1263_v40 = vpop.permute.xlu1 %1262  ;;  %v1820_v48 = vsel %vm1808_vm2, %v1783_v14, %v4939_v17  ;;  %v1810_v56 = vsel %vm1808_vm2, %v1773_v39, %v4940_v15  ;;  %v1846_v43 = vsel %vm1845_vm3, %v1809_v46, %v4944_v42  ;;  %v4945_v10 = vld [vmem:[#allocation2_spill] sm:$0xff]  ;;  %v4947_v14 = vld [vmem:[#allocation4_spill] sm:$0xff]  ;;  %v4951_v46 = vld [vmem:[#allocation59_spill] sm:$0xff] }
 0x25e   : > { %v3998_v12 = vsel %vm1919_vm5, %v1891_v33, %v1355_v11  ;;  %v4001_v32 = vsel %vm1882_vm4, %v1880_v18, %v1263_v40  ;;  %v1261_v27 = vpop.permute.xlu0 %1260  ;;  %v1857_v59 = vsel %vm1845_vm3, %v1820_v48, %v4942_v47  ;;  %v1847_v41 = vsel %vm1845_vm3, %v1810_v56, %v4943_v44  ;;  %v246_v11 = vld [vmem:[%s2922_s19 + $0x20] sm:$0xff]  ;;  %v256_v40 = vld [vmem:[%s2922_s19 + $0x70] sm:$0xff]  ;;  %v4950_v56 = vld [vmem:[#allocation31_spill] sm:$0xff] }
 0x25f   : > { %v4005_v63 = vsel %vm1882_vm4, %v1879_v22, %v1261_v27  ;;  %v1884_v37 = vsel %vm1882_vm4, %v1847_v41, %v3802_v8  ;;  %v1883_v55 = vsel %vm1882_vm4, %v1846_v43, %v3804_v7  ;;  %v2705_v8 = vld [vmem:[%s2922_s19 + $0xc5] sm:$0xff]  ;;  %v1739_v53 = vsel %vm1734_vm0, %v246_v11, %v4945_v10  ;;  %v2731_v7 = vld [vmem:[%s2922_s19 + $0x76] sm:$0xff] }
 0x260   : > { %v1738_v39 = vsel %vm1734_vm0, %v245_v26, %v4947_v14  ;;  %v4949_v48 = vld [vmem:[#allocation30_spill] sm:$0xff]  ;;  %v4953_v41 = vld [vmem:[#allocation61_spill] sm:$0xff] }
 0x261   : > { %v1776_v15 = vsel %vm1771_vm1, %v1739_v53, %v4949_v48  ;;  %v1775_v50 = vsel %vm1771_vm1, %v1738_v39, %v4950_v56  ;;  %v4954_v43 = vld [vmem:[#allocation89_spill] sm:$0xff] }
 0x262   : > { %v1812_v42 = vsel %vm1808_vm2, %v1775_v50, %v4953_v41  ;;  %v2687_v14 = vld [vmem:[%s2922_s19 + $0x35] sm:$0xff] }
 0x263   : > { %1628 = vrot.lane.b32.xlu2 %v2722_v51, %s2877_s27  ;;  %1396 = vrot.lane.b32.xlu1 %v3732_v28, %s2875_s25  ;;  %v1894_v28 = vsel %vm1882_vm4, %v1857_v59, %v3800_v9  ;;  %v2714_v51 = vld [vmem:[%s2922_s19 + $0x10d] sm:$0xff]  ;;  %v4957_v39 = vld [vmem:[#allocation5_spill] sm:$0xff] }
 0x264   : > { %1502 = vrot.lane.b32.xlu0 %v2695_v13, %s2876_s26  ;;  %v4946_v13 = vld [vmem:[#allocation3_spill] sm:$0xff]  ;;  %v4952_v59 = vld [vmem:[#allocation60_spill] sm:$0xff] }
 0x265   : > { %v1361_v33 = vpop.permute.xlu2 %1360  ;;  %v1341_v18 = vpop.permute.xlu1 %1340  ;;  %v1749_v16 = vsel %vm1734_vm0, %v256_v40, %v4946_v13  ;;  %v1813_v44 = vsel %vm1808_vm2, %v1776_v15, %v4952_v59  ;;  %v4959_v15 = vld [vmem:[#allocation7_spill] sm:$0xff]  ;;  %v4960_v50 = vld [vmem:[#allocation32_spill] sm:$0xff] }
 0x266   : > { %v4046_v6 = vsel %vm1919_vm5, %v1894_v28, %v1361_v33  ;;  %v4049_v22 = vsel %vm1919_vm5, %v1884_v37, %v1341_v18  ;;  %v1339_v27 = vpop.permute.xlu0 %1338  ;;  %v1786_v17 = vsel %vm1771_vm1, %v1749_v16, %v4948_v58  ;;  %v4955_v37 = vld [vmem:[#allocation90_spill] sm:$0xff]  ;;  %v4956_v18 = vld [vmem:[#allocation91_spill] sm:$0xff] }
 0x267   : > { %v4053_v9 = vsel %vm1919_vm5, %v1883_v55, %v1339_v27  ;;  %v1823_v47 = vsel %vm1808_vm2, %v1786_v17, %v4951_v46  ;;  %v1850_v33 = vsel %vm1845_vm3, %v1813_v44, %v4955_v37  ;;  %v1849_v11 = vsel %vm1845_vm3, %v1812_v42, %v4956_v18  ;;  %v4958_v17 = vld [vmem:[#allocation6_spill] sm:$0xff] }
 0x268   : > { %v1860_v28 = vsel %vm1845_vm3, %v1823_v47, %v4954_v43  ;;  %v1887_v55 = vsel %vm1882_vm4, %v1850_v33, %v3814_v0  ;;  %v1886_v10 = vsel %vm1882_vm4, %v1849_v11, %v3816_v5  ;;  %v2750_v0 = vld [vmem:[%s2922_s19 + $0x10e] sm:$0xff]  ;;  %v2741_v5 = vld [vmem:[%s2922_s19 + $0xc6] sm:$0xff]  ;;  %v4961_v47 = vld [vmem:[#allocation33_spill] sm:$0xff] }
 0x269   : > { %v1897_v40 = vsel %vm1882_vm4, %v1860_v28, %v3812_v1  ;;  %v4962_v44 = vld [vmem:[#allocation34_spill] sm:$0xff]  ;;  %v4964_v28 = vld [vmem:[#allocation63_spill] sm:$0xff]  ;;  %v4965_v33 = vld [vmem:[#allocation64_spill] sm:$0xff] }
 0x26a   : > { %v4963_v42 = vld [vmem:[#allocation62_spill] sm:$0xff]  ;;  %v4966_v11 = vld [vmem:[#allocation92_spill] sm:$0xff] }
 0x26b   : > { %1540 = vrot.lane.b32.xlu2 %v2714_v51, %s2876_s26  ;;  %1522 = vrot.lane.b32.xlu1 %v2705_v8, %s2876_s26  ;;  %v259_v51 = vld [vmem:[%s2922_s19 + $0x88] sm:$0xff]  ;;  %v249_v8 = vld [vmem:[%s2922_s19 + $0x38] sm:$0xff] }
 0x26c   : > { %1646 = vrot.lane.b32.xlu0 %v2731_v7, %s2877_s27  ;;  %v248_v7 = vld [vmem:[%s2922_s19 + $0x30] sm:$0xff]  ;;  %v1752_v58 = vsel %vm1734_vm0, %v259_v51, %v4957_v39  ;;  %v1742_v48 = vsel %vm1734_vm0, %v249_v8, %v4958_v17 }
 0x26d   : > { %v1367_v27 = vpop.permute.xlu2 %1366  ;;  %v1347_v26 = vpop.permute.xlu1 %1346  ;;  %v1741_v56 = vsel %vm1734_vm0, %v248_v7, %v4959_v15  ;;  %v1789_v46 = vsel %vm1771_vm1, %v1752_v58, %v4960_v50  ;;  %v1779_v59 = vsel %vm1771_vm1, %v1742_v48, %v4961_v47  ;;  %v2723_v15 = vld [vmem:[%s2922_s19 + $0x36] sm:$0xff] }
 0x26e   : > { %v4094_v53 = vsel %vm1919_vm5, %v1897_v40, %v1367_v27  ;;  %v4097_v13 = vsel %vm1919_vm5, %v1887_v55, %v1347_v26  ;;  %v1345_v16 = vpop.permute.xlu0 %1344  ;;  %v1778_v41 = vsel %vm1771_vm1, %v1741_v56, %v4962_v44  ;;  %v1826_v43 = vsel %vm1808_vm2, %v1789_v46, %v4963_v42  ;;  %v4967_v55 = vld [vmem:[#allocation93_spill] sm:$0xff]  ;;  %v4968_v26 = vld [vmem:[#allocation94_spill] sm:$0xff]  ;;  %v4972_v44 = vld [vmem:[#allocation35_spill] sm:$0xff] }
 0x26f   : > { %v4101_v1 = vsel %vm1919_vm5, %v1886_v10, %v1345_v16  ;;  %v1816_v37 = vsel %vm1808_vm2, %v1779_v59, %v4964_v28  ;;  %v1815_v18 = vsel %vm1808_vm2, %v1778_v41, %v4965_v33  ;;  %v1863_v40 = vsel %vm1845_vm3, %v1826_v43, %v4966_v11  ;;  %v4970_v50 = vld [vmem:[#allocation9_spill] sm:$0xff]  ;;  %v4973_v42 = vld [vmem:[#allocation36_spill] sm:$0xff]  ;;  %v4976_v11 = vld [vmem:[#allocation66_spill] sm:$0xff] }
 0x270   : > { %v1853_v27 = vsel %vm1845_vm3, %v1816_v37, %v4967_v55  ;;  %v1852_v51 = vsel %vm1845_vm3, %v1815_v18, %v4968_v26  ;;  %v1900_v8 = vsel %vm1882_vm4, %v1863_v40, %v3824_v23  ;;  %v2696_v47 = vld [vmem:[%s2922_s19 + $0x7d] sm:$0xff] }
 0x271   : > { %v1890_v10 = vsel %vm1882_vm4, %v1853_v27, %v3826_v19  ;;  %v1889_v39 = vsel %vm1882_vm4, %v1852_v51, %v3828_v57  ;;  %v4969_v19 = vld [vmem:[#allocation8_spill] sm:$0xff]  ;;  %v4971_v57 = vld [vmem:[#allocation10_spill] sm:$0xff]  ;;  %v4974_v28 = vld [vmem:[#allocation37_spill] sm:$0xff] }
 0x272   : > { %v4975_v33 = vld [vmem:[#allocation65_spill] sm:$0xff]  ;;  %v4977_v55 = vld [vmem:[#allocation110_spill] sm:$0xff]  ;;  %v4978_v27 = vld [vmem:[#allocation67_spill] sm:$0xff] }
 0x273   : > { %1486 = vrot.lane.b32.xlu2 %v2687_v14, %s2876_s26  ;;  %1684 = vrot.lane.b32.xlu1 %v2750_v0, %s2877_s27  ;;  %v262_v14 = vld [vmem:[%s2922_s19 + $0xa0] sm:$0xff]  ;;  %v252_v0 = vld [vmem:[%s2922_s19 + $0x50] sm:$0xff]  ;;  %v4979_v51 = vld [vmem:[#allocation95_spill] sm:$0xff] }
 0x274   : > { %1666 = vrot.lane.b32.xlu0 %v2741_v5, %s2877_s27  ;;  %v251_v5 = vld [vmem:[%s2922_s19 + $0x48] sm:$0xff]  ;;  %v1755_v56 = vsel %vm1734_vm0, %v262_v14, %v4969_v19  ;;  %v1745_v46 = vsel %vm1734_vm0, %v252_v0, %v4970_v50 }
 0x275   : > { %v1373_v16 = vpop.permute.xlu2 %1372  ;;  %v1353_v7 = vpop.permute.xlu1 %1352  ;;  %v1744_v59 = vsel %vm1734_vm0, %v251_v5, %v4971_v57  ;;  %v1792_v41 = vsel %vm1771_vm1, %v1755_v56, %v4972_v44  ;;  %v1782_v43 = vsel %vm1771_vm1, %v1745_v46, %v4973_v42  ;;  %v255_v19 = vld [vmem:[%s2922_s19 + $0x68] sm:$0xff]  ;;  %v254_v57 = vld [vmem:[%s2922_s19 + $0x60] sm:$0xff]  ;;  %v4983_v42 = vld [vmem:[#allocation12_spill] sm:$0xff] }
 0x276   : > { %v4142_v58 = vsel %vm1919_vm5, %v1900_v8, %v1373_v16  ;;  %v4145_v17 = vsel %vm1919_vm5, %v1890_v10, %v1353_v7  ;;  %v1351_v48 = vpop.permute.xlu0 %1350  ;;  %v1781_v37 = vsel %vm1771_vm1, %v1744_v59, %v4974_v28  ;;  %v1829_v18 = vsel %vm1808_vm2, %v1792_v41, %v4975_v33  ;;  %v4980_v10 = vld [vmem:[#allocation96_spill] sm:$0xff]  ;;  %v4981_v7 = vld [vmem:[#allocation97_spill] sm:$0xff]  ;;  %v4982_v44 = vld [vmem:[#allocation11_spill] sm:$0xff] }
 0x277   : > { %v4149_v23 = vsel %vm1919_vm5, %v1889_v39, %v1351_v48  ;;  %v1819_v40 = vsel %vm1808_vm2, %v1782_v43, %v4976_v11  ;;  %v1818_v26 = vsel %vm1808_vm2, %v1781_v37, %v4978_v27  ;;  %v1866_v8 = vsel %vm1845_vm3, %v1829_v18, %v4979_v51  ;;  %v2715_v59 = vld [vmem:[%s2922_s19 + $0x115] sm:$0xff]  ;;  %v4985_v33 = vld [vmem:[#allocation38_spill] sm:$0xff]  ;;  %v4986_v11 = vld [vmem:[#allocation39_spill] sm:$0xff] }
 0x278   : > { %v1856_v16 = vsel %vm1845_vm3, %v1819_v40, %v4980_v10  ;;  %v1855_v14 = vsel %vm1845_vm3, %v1818_v26, %v4981_v7  ;;  %v1903_v0 = vsel %vm1882_vm4, %v1866_v8, %v3836_v61  ;;  %v1748_v43 = vsel %vm1734_vm0, %v255_v19, %v4983_v42  ;;  %v4984_v28 = vld [vmem:[#allocation13_spill] sm:$0xff]  ;;  %v4988_v26 = vld [vmem:[#allocation68_spill] sm:$0xff] }
 0x279   : > { %v1893_v39 = vsel %vm1882_vm4, %v1856_v16, %v3838_v60  ;;  %v1892_v56 = vsel %vm1882_vm4, %v1855_v14, %v3840_v31  ;;  %v2706_v60 = vld [vmem:[%s2922_s19 + $0xcd] sm:$0xff]  ;;  %v2732_v31 = vld [vmem:[%s2922_s19 + $0x7e] sm:$0xff]  ;;  %v1747_v37 = vsel %vm1734_vm0, %v254_v57, %v4984_v28  ;;  %v1785_v40 = vsel %vm1771_vm1, %v1748_v43, %v4986_v11 }
 0x27a   : > { %v4989_v8 = vld [vmem:[#allocation69_spill] sm:$0xff]  ;;  %v4990_v16 = vld [vmem:[#allocation70_spill] sm:$0xff] }
 0x27b   : > { %1630 = vrot.lane.b32.xlu2 %v2723_v15, %s2877_s27  ;;  %1398 = vrot.lane.b32.xlu1 %v4977_v55, %s2875_s25  ;;  %v265_v15 = vld [vmem:[%s2922_s19 + $0xb8] sm:$0xff]  ;;  %v4987_v55 = vld [vmem:[#allocation40_spill] sm:$0xff]  ;;  %v1822_v10 = vsel %vm1808_vm2, %v1785_v40, %v4989_v8  ;;  %v4991_v14 = vld [vmem:[#allocation98_spill] sm:$0xff] }
 0x27c   : > { %1504 = vrot.lane.b32.xlu0 %v2696_v47, %s2876_s26  ;;  %v1758_v41 = vsel %vm1734_vm0, %v265_v15, %v4982_v44  ;;  %v1784_v27 = vsel %vm1771_vm1, %v1747_v37, %v4987_v55  ;;  %v2688_v28 = vld [vmem:[%s2922_s19 + $0x3d] sm:$0xff]  ;;  %v4996_v40 = vld [vmem:[#allocation16_spill] sm:$0xff] }
 0x27d   : > { %v1379_v48 = vpop.permute.xlu2 %1378  ;;  %v1359_v5 = vpop.permute.xlu1 %1358  ;;  %v1795_v18 = vsel %vm1771_vm1, %v1758_v41, %v4985_v33  ;;  %v1821_v7 = vsel %vm1808_vm2, %v1784_v27, %v4990_v16  ;;  %v4994_v37 = vld [vmem:[#allocation14_spill] sm:$0xff]  ;;  %v4997_v27 = vld [vmem:[#allocation41_spill] sm:$0xff] }
 0x27e   : > { %v4190_v50 = vsel %vm1919_vm5, %v1903_v0, %v1379_v48  ;;  %v4193_v46 = vsel %vm1919_vm5, %v1893_v39, %v1359_v5  ;;  %v1357_v47 = vpop.permute.xlu0 %1356  ;;  %v1832_v51 = vsel %vm1808_vm2, %v1795_v18, %v4988_v26  ;;  %v4992_v39 = vld [vmem:[#allocation99_spill] sm:$0xff]  ;;  %v4993_v5 = vld [vmem:[#allocation100_spill] sm:$0xff] }
 0x27f   : > { %v4197_v61 = vsel %vm1919_vm5, %v1892_v56, %v1357_v47  ;;  %v1869_v0 = vsel %vm1845_vm3, %v1832_v51, %v4991_v14  ;;  %v1859_v48 = vsel %vm1845_vm3, %v1822_v10, %v4992_v39  ;;  %v1858_v15 = vsel %vm1845_vm3, %v1821_v7, %v4993_v5  ;;  %v4995_v18 = vld [vmem:[#allocation15_spill] sm:$0xff]  ;;  %v4998_v51 = vld [vmem:[#allocation42_spill] sm:$0xff] }
 0x280   : > { %v1906_v19 = vsel %vm1882_vm4, %v1869_v0, %v3848_v3  ;;  %v1896_v56 = vsel %vm1882_vm4, %v1859_v48, %v3850_v4  ;;  %v1895_v44 = vsel %vm1882_vm4, %v1858_v15, %v3852_v62  ;;  %v2751_v4 = vld [vmem:[%s2922_s19 + $0x116] sm:$0xff]  ;;  %v2742_v62 = vld [vmem:[%s2922_s19 + $0xce] sm:$0xff] }
 0x281   : > { %v4999_v10 = vld [vmem:[#allocation43_spill] sm:$0xff]  ;;  %v5001_v0 = vld [vmem:[#allocation72_spill] sm:$0xff]  ;;  %v5002_v48 = vld [vmem:[#allocation73_spill] sm:$0xff] }
 0x282   : > { %v5000_v7 = vld [vmem:[#allocation71_spill] sm:$0xff]  ;;  %v5003_v15 = vld [vmem:[#allocation101_spill] sm:$0xff] }
 0x283   : > { %1542 = vrot.lane.b32.xlu2 %v2715_v59, %s2876_s26  ;;  %1524 = vrot.lane.b32.xlu1 %v2706_v60, %s2876_s26  ;;  %v268_v59 = vld [vmem:[%s2922_s19 + $0xd0] sm:$0xff]  ;;  %v258_v60 = vld [vmem:[%s2922_s19 + $0x80] sm:$0xff] }
 0x284   : > { %1648 = vrot.lane.b32.xlu0 %v2732_v31, %s2877_s27  ;;  %v257_v31 = vld [vmem:[%s2922_s19 + $0x78] sm:$0xff]  ;;  %v1761_v33 = vsel %vm1734_vm0, %v268_v59, %v4994_v37  ;;  %v1751_v11 = vsel %vm1734_vm0, %v258_v60, %v4995_v18 }
 0x285   : > { %v1385_v47 = vpop.permute.xlu2 %1384  ;;  %v1365_v57 = vpop.permute.xlu1 %1364  ;;  %v1750_v55 = vsel %vm1734_vm0, %v257_v31, %v4996_v40  ;;  %v1798_v26 = vsel %vm1771_vm1, %v1761_v33, %v4997_v27  ;;  %v1788_v8 = vsel %vm1771_vm1, %v1751_v11, %v4998_v51  ;;  %v2724_v18 = vld [vmem:[%s2922_s19 + $0x3e] sm:$0xff]  ;;  %v5006_v40 = vld [vmem:[#allocation115_spill] sm:$0xff]  ;;  %v264_v51 = vld [vmem:[%s2922_s19 + $0xb0] sm:$0xff] }
 0x286   : > { %v4238_v41 = vsel %vm1919_vm5, %v1906_v19, %v1385_v47  ;;  %v4241_v42 = vsel %vm1919_vm5, %v1896_v56, %v1365_v57  ;;  %v1363_v43 = vpop.permute.xlu0 %1362  ;;  %v1787_v16 = vsel %vm1771_vm1, %v1750_v55, %v4999_v10  ;;  %v1835_v14 = vsel %vm1808_vm2, %v1798_v26, %v5000_v7  ;;  %v5004_v56 = vld [vmem:[#allocation102_spill] sm:$0xff]  ;;  %v5005_v57 = vld [vmem:[#allocation103_spill] sm:$0xff] }
 0x287   : > { %v4245_v3 = vsel %vm1919_vm5, %v1895_v44, %v1363_v43  ;;  %v1825_v39 = vsel %vm1808_vm2, %v1788_v8, %v5001_v0  ;;  %v1824_v5 = vsel %vm1808_vm2, %v1787_v16, %v5002_v48  ;;  %v1872_v19 = vsel %vm1845_vm3, %v1835_v14, %v5003_v15  ;;  %v2697_v11 = vld [vmem:[%s2922_s19 + $0x85] sm:$0xff]  ;;  %v2716_v7 = vld [vmem:[%s2922_s19 + $0x11d] sm:$0xff]  ;;  %v2707_v14 = vld [vmem:[%s2922_s19 + $0xd5] sm:$0xff] }
 0x288   : > { %v1862_v47 = vsel %vm1845_vm3, %v1825_v39, %v5004_v56  ;;  %v1861_v59 = vsel %vm1845_vm3, %v1824_v5, %v5005_v57  ;;  %v1909_v60 = vsel %vm1882_vm4, %v1872_v19, %v3860_v35  ;;  %v2034_v35 = vld [vmem:[%s4811_s1 + $0x20] sm:$0xf]  ;;  %v2031_v55 = vld [vmem:[%s4811_s1 + $0x8] sm:$0xff]  ;;  %v5007_v0 = vld [vmem:[#allocation21_spill] sm:$0xff] }
 0x289   : > { %v1899_v44 = vsel %vm1882_vm4, %v1862_v47, %v3862_v21  ;;  %2797 = vmatpush.msk.msra.mxu2 %vm2148_vm6, %v2034_v35  ;;  %2798 = vmatpush.msk.msra.mxu3 %vm2148_vm6, %v2034_v35  ;;  %v2030_v10 = vld [vmem:[%s4811_s1] sm:$0xff]  ;;  %v263_v16 = vld [vmem:[%s2922_s19 + $0xa8] sm:$0xff]  ;;  %v1757_v39 = vsel %vm1734_vm0, %v264_v51, %v5007_v0  ;;  %v5009_v19 = vld [vmem:[#allocation48_spill] sm:$0xff] }
 0x28a   : > { %2757 = vmatpush.msk.msra.mxu0 %vm2148_vm6, %v2034_v35  ;;  %2796 = vmatpush.msk.msra.mxu1 %vm2148_vm6, %v2034_v35  ;;  %v2733_v48 = vld [vmem:[%s2922_s19 + $0x86] sm:$0xff]  ;;  %v1794_v56 = vsel %vm1771_vm1, %v1757_v39, %v5009_v19  ;;  %v5010_v47 = vld [vmem:[#allocation49_spill] sm:$0xff] }
 0x28b   : > { %1488 = vrot.lane.b32.xlu2 %v2688_v28, %s2876_s26  ;;  %1686 = vrot.lane.b32.xlu1 %v2751_v4, %s2877_s27  ;;  %v1898_v28 = vsel %vm1882_vm4, %v1861_v59, %v3864_v2  ;;  %v2033_v2 = vld [vmem:[%s4811_s1 + $0x18] sm:$0xff]  ;;  %v5008_v5 = vld [vmem:[#allocation22_spill] sm:$0xff]  ;;  %v5015_v0 = vld [vmem:[#allocation23_spill] sm:$0xff] }
 0x28c   : > { %1668 = vrot.lane.b32.xlu0 %v2742_v62, %s2877_s27  ;;  %2800 = vmatpush.msra.mxu2 %v2033_v2  ;;  %v2032_v62 = vld [vmem:[%s4811_s1 + $0x10] sm:$0xff]  ;;  %v1756_v15 = vsel %vm1734_vm0, %v263_v16, %v5008_v5  ;;  %v5011_v59 = vld [vmem:[#allocation78_spill] sm:$0xff]  ;;  %v5018_v19 = vld [vmem:[#allocation51_spill] sm:$0xff] }
 0x28d   : > { %v1391_v43 = vpop.permute.xlu2 %1390  ;;  %v1371_v31 = vpop.permute.xlu1 %1370  ;;  %2801 = vmatpush.msra.mxu3 %v2033_v2  ;;  %2164 = vmatpush.msra.mxu0 %v2033_v2  ;;  %v1793_v57 = vsel %vm1771_vm1, %v1756_v15, %v5010_v47  ;;  %v2743_v39 = vld [vmem:[%s2922_s19 + $0xd6] sm:$0xff]  ;;  %v5017_v15 = vld [vmem:[#allocation50_spill] sm:$0xff] }
 0x28e   : > { %v4284_v4 = vsel %vm1919_vm5, %v1909_v60, %v1391_v43  ;;  %v4287_v37 = vsel %vm1919_vm5, %v1899_v44, %v1371_v31  ;;  %v1369_v33 = vpop.permute.xlu0 %1368  ;;  %2799 = vmatpush.msra.mxu1 %v2033_v2  ;;  %2803 = vmatpush.msra.mxu2 %v2032_v62  ;;  %v1831_v60 = vsel %vm1808_vm2, %v1794_v56, %v5011_v59  ;;  %v5012_v44 = vld [vmem:[#allocation79_spill] sm:$0xff]  ;;  %v5013_v31 = vld [vmem:[#allocation108_spill] sm:$0xff]  ;;  %v5020_v59 = vld [vmem:[#allocation81_spill] sm:$0xff] }
 0x28f   : > { %v4293_v21 = vsel %vm1919_vm5, %v1898_v28, %v1369_v33  ;;  %2804 = vmatpush.msra.mxu3 %v2032_v62  ;;  %2165 = vmatpush.msra.mxu0 %v2032_v62  ;;  %v1830_v43 = vsel %vm1808_vm2, %v1793_v57, %v5012_v44  ;;  %v1868_v28 = vsel %vm1845_vm3, %v1831_v60, %v5013_v31  ;;  %v5014_v33 = vld [vmem:[#allocation109_spill] sm:$0xff]  ;;  %v5019_v47 = vld [vmem:[#allocation80_spill] sm:$0xff]  ;;  %v5021_v44 = vld [vmem:[#allocation111_spill] sm:$0xff] }
 0x290   : > { %2806 = vmatpush.msra.mxu2 %v2031_v55  ;;  %2802 = vmatpush.msra.mxu1 %v2032_v62  ;;  %v1867_v35 = vsel %vm1845_vm3, %v1830_v43, %v5014_v33  ;;  %v1905_v2 = vsel %vm1882_vm4, %v1868_v28, %v3886_v54  ;;  %v267_v62 = vld [vmem:[%s2922_s19 + $0xc8] sm:$0xff]  ;;  %v5022_v31 = vld [vmem:[#allocation112_spill] sm:$0xff] }
 0x291   : > { %2807 = vmatpush.msra.mxu3 %v2031_v55  ;;  %2166 = vmatpush.msra.mxu0 %v2031_v55  ;;  %v1760_v54 = vsel %vm1734_vm0, %v267_v62, %v5015_v0 }
 0x292   : > { %2809 = vmatpush.msra.mxu2 %v2030_v10  ;;  %2805 = vmatpush.msra.mxu1 %v2031_v55 }
 0x293   : > { %1632 = vrot.lane.b32.xlu2 %v2724_v18, %s2877_s27  ;;  %1400 = vrot.lane.b32.xlu1 %v5006_v40, %s2875_s25  ;;  %v1904_v40 = vsel %vm1882_vm4, %v1867_v35, %v3888_v45  ;;  %v1797_v45 = vsel %vm1771_vm1, %v1760_v54, %v5017_v15 }
 0x294   : > { %1506 = vrot.lane.b32.xlu0 %v2697_v11, %s2876_s26  ;;  %2810 = vmatpush.msra.mxu3 %v2030_v10  ;;  %v1834_v57 = vsel %vm1808_vm2, %v1797_v45, %v5019_v47  ;;  %v5027_v47 = vld [vmem:[#allocation106_spill] sm:$0xff] }
 0x295   : > { %v4310_v27 = vpop.permute.xlu2 %1518  ;;  %v4312_v26 = vpop.permute.xlu1 %1376  ;;  %2167 = vmatpush.msra.mxu0 %v2030_v10  ;;  %2808 = vmatpush.msra.mxu1 %v2030_v10  ;;  %v266_v10 = vld [vmem:[%s2922_s19 + $0xc0] sm:$0xff]  ;;  %v1871_v43 = vsel %vm1845_vm3, %v1834_v57, %v5021_v44 }
 0x296   : > { %v4315_v8 = vpop.permute.xlu0 %1374  ;;  %v1908_v33 = vsel %vm1882_vm4, %v1871_v43, %v3905_v30  ;;  %v5023_v30 = vld [vmem:[#allocation114_spill] sm:$0xff] }
 0x297   : > { %v5028_v44 = vld [vmem:[#allocation26_spill] sm:$0xff] }
 0x29b   : > { %1544 = vrot.lane.b32.xlu2 %v2716_v7, %s2876_s26  ;;  %1526 = vrot.lane.b32.xlu1 %v2707_v14, %s2876_s26  ;;  %v2689_v7 = vld [vmem:[%s2922_s19 + $0x45] sm:$0xff] }
 0x29c   : > { %1650 = vrot.lane.b32.xlu0 %v2733_v48, %s2877_s27  ;;  %v2752_v14 = vld [vmem:[%s2922_s19 + $0x11e] sm:$0xff]  ;;  %v5016_v48 = vld [vmem:[#allocation24_spill] sm:$0xff] }
 0x29d   : > { %v4345_v18 = vpop.permute.xlu2 %1680  ;;  %v1383_v11 = vpop.permute.xlu1 %1382  ;;  %v1759_v5 = vsel %vm1734_vm0, %v266_v10, %v5016_v48  ;;  %v2725_v10 = vld [vmem:[%s2922_s19 + $0x46] sm:$0xff]  ;;  %v269_v48 = vld [vmem:[%s2922_s19 + $0xd8] sm:$0xff] }
 0x29e   : > { %v4351_v55 = vsel %vm1919_vm5, %v1905_v2, %v1383_v11  ;;  %v1381_v51 = vpop.permute.xlu0 %1380  ;;  %v1796_v56 = vsel %vm1771_vm1, %v1759_v5, %v5018_v19  ;;  %v5025_v5 = vld [vmem:[#allocation46_spill] sm:$0xff]  ;;  %v5026_v19 = vld [vmem:[#allocation76_spill] sm:$0xff]  ;;  %v1762_v43 = vsel %vm1734_vm0, %v269_v48, %v5028_v44 }
 0x29f   : > { %v4355_v16 = vsel %vm1919_vm5, %v1904_v40, %v1381_v51  ;;  %v1833_v60 = vsel %vm1808_vm2, %v1796_v56, %v5020_v59  ;;  %v2717_v59 = vld [vmem:[%s2922_s19 + $0x125] sm:$0xff]  ;;  %v2699_v44 = vld [vmem:[%s2922_s19 + $0x95] sm:$0xff] }
 0x2a0   : > { %v1870_v28 = vsel %vm1845_vm3, %v1833_v60, %v5022_v31  ;;  %v2708_v60 = vld [vmem:[%s2922_s19 + $0xdd] sm:$0xff] }
 0x2a1   : > { %v1907_v11 = vsel %vm1882_vm4, %v1870_v28, %v3911_v52  ;;  %v5024_v52 = vld [vmem:[#allocation19_spill] sm:$0xff] }
 0x2a2   : > { %v2734_v28 = vld [vmem:[%s2922_s19 + $0x8e] sm:$0xff] }
 0x2a3   : > { %1490 = vrot.lane.b32.xlu2 %v2689_v7, %s2876_s26  ;;  %1688 = vrot.lane.b32.xlu1 %v2752_v14, %s2877_s27  ;;  %v2698_v7 = vld [vmem:[%s2922_s19 + $0x8d] sm:$0xff] }
 0x2a4   : > { %1670 = vrot.lane.b32.xlu0 %v2743_v39, %s2877_s27  ;;  %v260_v14 = vld [vmem:[%s2922_s19 + $0x90] sm:$0xff] }
 0x2a5   : > { %v1627_v35 = vpop.permute.xlu2 %1626  ;;  %v1389_v2 = vpop.permute.xlu1 %1388  ;;  %v1753_v0 = vsel %vm1734_vm0, %v260_v14, %v5024_v52 }
 0x2a6   : > { %v4384_v62 = vsel %vm1919_vm5, %v1908_v33, %v1389_v2  ;;  %v1387_v40 = vpop.permute.xlu0 %1386  ;;  %v1790_v15 = vsel %vm1771_vm1, %v1753_v0, %v5025_v5  ;;  %v5029_v33 = vld [vmem:[#allocation53_spill] sm:$0xff] }
 0x2a7   : > { %v4387_v51 = vsel %vm1919_vm5, %v1907_v11, %v1387_v40  ;;  %v1827_v56 = vsel %vm1808_vm2, %v1790_v15, %v5026_v19  ;;  %v1799_v2 = vsel %vm1771_vm1, %v1762_v43, %v5029_v33  ;;  %v5030_v40 = vld [vmem:[#allocation83_spill] sm:$0xff]  ;;  %v270_v43 = vld [vmem:[%s2922_s19 + $0xe0] sm:$0xff]  ;;  %v5033_v33 = vld [vmem:[#allocation25_spill] sm:$0xff] }
 0x2a8   : > { %v1864_v57 = vsel %vm1845_vm3, %v1827_v56, %v5027_v47  ;;  %v2753_v56 = vld [vmem:[%s2922_s19 + $0x126] sm:$0xff] }
 0x2a9   : > { %v1901_v31 = vsel %vm1882_vm4, %v1864_v57, %v3876_v24 }
 0x2aa   : > { %v1938_v11 = vsel %vm1919_vm5, %v1901_v31, %v4315_v8  ;;  %v5032_v31 = vld [vmem:[#allocation113_spill] sm:$0xff] }
 0x2ab   : > { %1634 = vrot.lane.b32.xlu2 %v2725_v10, %s2877_s27  ;;  %1402 = vrot.lane.b32.xlu1 %v5023_v30, %s2875_s25  ;;  %v1836_v10 = vsel %vm1808_vm2, %v1799_v2, %v5030_v40  ;;  %v1975_v52 = vsel %vm1956_vm7, %v1938_v11, %v4310_v27  ;;  %v2744_v27 = vld [vmem:[%s2922_s19 + $0xde] sm:$0xff]  ;;  %v5034_v11 = vld [vmem:[#allocation52_spill] sm:$0xff] }
 0x2ac   : > { %1508 = vrot.lane.b32.xlu0 %v2698_v7, %s2876_s26  ;;  %v5031_v7 = vld [vmem:[#allocation117_spill] sm:$0xff] }
 0x2ad   : > { %v4398_v54 = vpop.permute.xlu2 %1538  ;;  %v4400_v39 = vpop.permute.xlu1 %1394  ;;  %v1873_v24 = vsel %vm1845_vm3, %v1836_v10, %v5031_v7 }
 0x2ae   : > { %v1393_v45 = vpop.permute.xlu0 %1392  ;;  %v1910_v8 = vsel %vm1882_vm4, %v1873_v24, %v3935_v29  ;;  %v2690_v29 = vld [vmem:[%s2922_s19 + $0x4d] sm:$0xff]  ;;  %v5035_v24 = vld [vmem:[#allocation82_spill] sm:$0xff] }
 0x2af   : > { %v1947_v0 = vsel %vm1919_vm5, %v1910_v8, %v1393_v45 }
 0x2b3   : > { %1546 = vrot.lane.b32.xlu2 %v2717_v59, %s2876_s26  ;;  %1528 = vrot.lane.b32.xlu1 %v2708_v60, %s2876_s26  ;;  %v2726_v60 = vld [vmem:[%s2922_s19 + $0x4e] sm:$0xff] }
 0x2b4   : > { %1652 = vrot.lane.b32.xlu0 %v2734_v28, %s2877_s27  ;;  %v261_v28 = vld [vmem:[%s2922_s19 + $0x98] sm:$0xff] }
 0x2b5   : > { %v1485_v14 = vpop.permute.xlu2 %1484  ;;  %v1663_v30 = vpop.permute.xlu1 %1662 }
 0x2b6   : > { %v1537_v48 = vpop.permute.xlu0 %1536  ;;  %v2012_v5 = vsel %vm1993_vm8, %v1975_v52, %v1663_v30  ;;  %v1958_v30 = vsel %vm1956_vm7, %v4049_v22, %v1485_v14  ;;  %v2735_v14 = vld [vmem:[%s2922_s19 + $0x96] sm:$0xff] }
 0x2b7   : > { %v1984_v15 = vsel %vm1956_vm7, %v1947_v0, %v1537_v48  ;;  %2776 = vmatmul.msk.f32.vlgmr.msra.gmra.mxu2 %vm2039_vm9, %v2012_v5  ;;  %v5036_v0 = vld [vmem:[#allocation18_spill] sm:$0xff]  ;;  %v5037_v5 = vld [vmem:[#allocation116_spill] sm:$0xff] }
 0x2b8   : > { %v2021_v19 = vsel %vm1993_vm8, %v1984_v15, %v4345_v18  ;;  %v1754_v48 = vsel %vm1734_vm0, %v261_v28, %v5036_v0  ;;  %v2700_v0 = vld [vmem:[%s2922_s19 + $0x9d] sm:$0xff] }
 0x2b9   : > { %2785 = vmatmul.msk.f32.vlgmr.msra.gmra.mxu3 %vm2039_vm9, %v2021_v19 }
 0x2bb   : > { %1492 = vrot.lane.b32.xlu2 %v2690_v29, %s2876_s26  ;;  %1690 = vrot.lane.b32.xlu1 %v2753_v56, %s2877_s27  ;;  %v2709_v29 = vld [vmem:[%s2922_s19 + $0xe5] sm:$0xff]  ;;  %v5038_v56 = vld [vmem:[#allocation45_spill] sm:$0xff] }
 0x2bc   : > { %1672 = vrot.lane.b32.xlu0 %v2744_v27, %s2877_s27  ;;  %v1791_v27 = vsel %vm1771_vm1, %v1754_v48, %v5038_v56  ;;  %v271_v48 = vld [vmem:[%s2922_s19 + $0xe8] sm:$0xff] }
 0x2bd   : > { %v1629_v45 = vpop.permute.xlu2 %1628  ;;  %v1501_v47 = vpop.permute.xlu1 %1500 }
 0x2be   : > { %v1483_v57 = vpop.permute.xlu0 %1482  ;;  %v1966_v10 = vsel %vm1956_vm7, %v4197_v61, %v1501_v47  ;;  %v1995_v19 = vsel %vm1993_vm8, %v1958_v30, %v1629_v45  ;;  %v2718_v61 = vld [vmem:[%s2922_s19 + $0x12d] sm:$0xff]  ;;  %v2727_v30 = vld [vmem:[%s2922_s19 + $0x56] sm:$0xff] }
 0x2bf   : > { %v1957_v59 = vsel %vm1956_vm7, %v4053_v9, %v1483_v57  ;;  %v1763_v9 = vsel %vm1734_vm0, %v270_v43, %v5033_v33  ;;  %v5039_v47 = vld [vmem:[#allocation75_spill] sm:$0xff] }
 0x2c0   : > { %v1994_v18 = vsel %vm1993_vm8, %v1957_v59, %v1627_v35  ;;  %v1800_v40 = vsel %vm1771_vm1, %v1763_v9, %v5034_v11  ;;  %v1828_v57 = vsel %vm1808_vm2, %v1791_v27, %v5039_v47 }
 0x2c1   : > { %2758 = vmatmul.msk.f32.vlgmr.msra.gmra.mxu0 %vm2039_vm9, %v1994_v18  ;;  %v1837_v8 = vsel %vm1808_vm2, %v1800_v40, %v5035_v24  ;;  %v5040_v18 = vld [vmem:[#allocation105_spill] sm:$0xff]  ;;  %v2754_v40 = vld [vmem:[%s2922_s19 + $0x12e] sm:$0xff] }
 0x2c2   : > { %v1874_v15 = vsel %vm1845_vm3, %v1837_v8, %v5037_v5  ;;  %v1865_v45 = vsel %vm1845_vm3, %v1828_v57, %v5040_v18  ;;  %v5045_v57 = vld [vmem:[#allocation104_spill] sm:$0xff] }
 0x2c3   : > { %1636 = vrot.lane.b32.xlu2 %v2726_v60, %s2877_s27  ;;  %1404 = vrot.lane.b32.xlu1 %v5032_v31, %s2875_s25  ;;  %v1911_v22 = vsel %vm1882_vm4, %v1874_v15, %v3929_v20  ;;  %v5041_v20 = vld [vmem:[#allocation121_spill] sm:$0xff] }
 0x2c4   : > { %1510 = vrot.lane.b32.xlu0 %v2699_v44, %s2876_s26  ;;  %v1948_v59 = vsel %vm1919_vm5, %v1911_v22, %v4400_v39  ;;  %v1902_v60 = vsel %vm1882_vm4, %v1865_v45, %v5041_v20  ;;  %v5044_v22 = vld [vmem:[#allocation74_spill] sm:$0xff]  ;;  %v2719_v18 = vld [vmem:[%s2922_s19 + $0x135] sm:$0xff]  ;;  %v2710_v45 = vld [vmem:[%s2922_s19 + $0xed] sm:$0xff] }
 0x2c5   : > { %v4458_v2 = vpop.permute.xlu2 %1540  ;;  %v1521_v35 = vpop.permute.xlu1 %1520  ;;  %v1939_v44 = vsel %vm1919_vm5, %v1902_v60, %v4312_v26  ;;  %v1985_v31 = vsel %vm1956_vm7, %v1948_v59, %v4398_v54  ;;  %v2691_v26 = vld [vmem:[%s2922_s19 + $0x55] sm:$0xff] }
 0x2c6   : > { %v1645_v7 = vpop.permute.xlu0 %1644  ;;  %v1976_v28 = vsel %vm1956_vm7, %v1939_v44, %v1521_v35  ;;  %v5046_v20 = vld [vmem:[#allocation120_spill] sm:$0xff]  ;;  %v2736_v44 = vld [vmem:[%s2922_s19 + $0x9e] sm:$0xff] }
 0x2c7   : > { %v2003_v52 = vsel %vm1993_vm8, %v1966_v10, %v1645_v7  ;;  %v2745_v10 = vld [vmem:[%s2922_s19 + $0xe6] sm:$0xff] }
 0x2c8   : > { %2767 = vmatmul.msk.f32.vlgmr.msra.gmra.mxu1 %vm2039_vm9, %v2003_v52  ;;  %v2683_v52 = vld [vmem:[%s2922_s19 + $0x134] sm:$0xff] }
 0x2c9   : > { %2759 = vmatmul.msk.f32.gmra.mxu0 %vm2039_vm9, %v1995_v19 }
 0x2cb   : > { %1548 = vrot.lane.b32.xlu2 %v2718_v61, %s2876_s26  ;;  %1530 = vrot.lane.b32.xlu1 %v2709_v29, %s2876_s26  ;;  %v5043_v61 = vld [vmem:[#allocation44_spill] sm:$0xff] }
 0x2cc   : > { %1654 = vrot.lane.b32.xlu0 %v2735_v14, %s2877_s27 }
 0x2cd   : > { %v1487_v43 = vpop.permute.xlu2 %1486  ;;  %v1683_v39 = vpop.permute.xlu1 %1682 }
 0x2ce   : > { %v1665_v33 = vpop.permute.xlu0 %1664  ;;  %v2022_v9 = vsel %vm1993_vm8, %v1985_v31, %v1683_v39  ;;  %v1959_v54 = vsel %vm1956_vm7, %v3933_v38, %v1487_v43  ;;  %v5042_v38 = vld [vmem:[#allocation17_spill] sm:$0xff] }
 0x2cf   : > { %v2013_v11 = vsel %vm1993_vm8, %v1976_v28, %v1665_v33  ;;  %2786 = vmatmul.msk.f32.gmra.mxu3 %vm2039_vm9, %v2022_v9  ;;  %v1764_v5 = vsel %vm1734_vm0, %v271_v48, %v5042_v38 }
 0x2d0   : > { %2777 = vmatmul.msk.f32.gmra.mxu2 %vm2039_vm9, %v2013_v11  ;;  %v1801_v29 = vsel %vm1771_vm1, %v1764_v5, %v5043_v61  ;;  %v5048_v5 = vld [vmem:[#allocation55_spill] sm:$0xff] }
 0x2d1   : > { %v1838_v14 = vsel %vm1808_vm2, %v1801_v29, %v5044_v22 }
 0x2d2   : > { %v1875_v59 = vsel %vm1845_vm3, %v1838_v14, %v5045_v57  ;;  %v5050_v14 = vld [vmem:[#allocation119_spill] sm:$0xff]  ;;  %v2720_v57 = vld [vmem:[%s2922_s19 + $0x13d] sm:$0xff] }
 0x2d3   : > { %1494 = vrot.lane.b32.xlu2 %v2691_v26, %s2876_s26  ;;  %1692 = vrot.lane.b32.xlu1 %v2754_v40, %s2877_s27  ;;  %v1912_v60 = vsel %vm1882_vm4, %v1875_v59, %v5046_v20  ;;  %v2692_v26 = vld [vmem:[%s2922_s19 + $0x5d] sm:$0xff]  ;;  %v2711_v59 = vld [vmem:[%s2922_s19 + $0xf5] sm:$0xff] }
 0x2d4   : > { %1674 = vrot.lane.b32.xlu0 %v2745_v10, %s2877_s27  ;;  %v2755_v40 = vld [vmem:[%s2922_s19 + $0x136] sm:$0xff]  ;;  %v2746_v10 = vld [vmem:[%s2922_s19 + $0xee] sm:$0xff] }
 0x2d5   : > { %v1631_v35 = vpop.permute.xlu2 %1630  ;;  %v1397_v7 = vpop.permute.xlu1 %1396 }
 0x2d6   : > { %v1503_v24 = vpop.permute.xlu0 %1502  ;;  %v1996_v8 = vsel %vm1993_vm8, %v1959_v54, %v1631_v35 }
 0x2d7   : > { %2760 = vmatmul.msk.f32.gmra.mxu0 %vm2039_vm9, %v1996_v8  ;;  %v1967_v56 = vsel %vm1956_vm7, %v4193_v46, %v1503_v24  ;;  %v1949_v46 = vsel %vm1919_vm5, %v1912_v60, %v1397_v7  ;;  %v2728_v24 = vld [vmem:[%s2922_s19 + $0x5e] sm:$0xff] }
 0x2d8   : > { %v1986_v31 = vsel %vm1956_vm7, %v1949_v46, %v4458_v2  ;;  %v2684_v8 = vld [vmem:[%s2922_s19 + $0x13c] sm:$0xff] }
 0x2db   : > { %1638 = vrot.lane.b32.xlu2 %v2727_v30, %s2877_s27  ;;  %1406 = vrot.lane.b32.xlu1 %v2683_v52, %s2875_s25  ;;  %v2701_v30 = vld [vmem:[%s2922_s19 + $0xa5] sm:$0xff]  ;;  %v272_v52 = vld [vmem:[%s2922_s19 + $0xf0] sm:$0xff] }
 0x2dc   : > { %1512 = vrot.lane.b32.xlu0 %v2700_v0, %s2876_s26 }
 0x2dd   : > { %v4522_v15 = vpop.permute.xlu2 %1542  ;;  %v1523_v19 = vpop.permute.xlu1 %1522 }
 0x2de   : > { %v1647_v27 = vpop.permute.xlu0 %1646  ;;  %v1977_v28 = vsel %vm1956_vm7, %v4190_v50, %v1523_v19 }
 0x2df   : > { %v2004_v47 = vsel %vm1993_vm8, %v1967_v56, %v1647_v27  ;;  %v5049_v56 = vld [vmem:[#allocation85_spill] sm:$0xff] }
 0x2e0   : > { %2768 = vmatmul.msk.f32.gmra.mxu1 %vm2039_vm9, %v2004_v47 }
 0x2e3   : > { %1550 = vrot.lane.b32.xlu2 %v2719_v18, %s2876_s26  ;;  %1532 = vrot.lane.b32.xlu1 %v2710_v45, %s2876_s26  ;;  %v2737_v45 = vld [vmem:[%s2922_s19 + $0xa6] sm:$0xff] }
 0x2e4   : > { %1656 = vrot.lane.b32.xlu0 %v2736_v44, %s2877_s27 }
 0x2e5   : > { %v1489_v43 = vpop.permute.xlu2 %1488  ;;  %v1685_v39 = vpop.permute.xlu1 %1684 }
 0x2e6   : > { %v1667_v33 = vpop.permute.xlu0 %1666  ;;  %v2023_v9 = vsel %vm1993_vm8, %v1986_v31, %v1685_v39  ;;  %v1960_v50 = vsel %vm1956_vm7, %v4101_v1, %v1489_v43  ;;  %v5047_v1 = vld [vmem:[#allocation28_spill] sm:$0xff]  ;;  %v2693_v31 = vld [vmem:[%s2922_s19 + $0x65] sm:$0xff] }
 0x2e7   : > { %v2014_v11 = vsel %vm1993_vm8, %v1977_v28, %v1667_v33  ;;  %2787 = vmatmul.msk.f32.gmra.mxu3 %vm2039_vm9, %v2023_v9  ;;  %v1765_v0 = vsel %vm1734_vm0, %v272_v52, %v5047_v1  ;;  %v2756_v28 = vld [vmem:[%s2922_s19 + $0x13e] sm:$0xff]  ;;  %v2747_v33 = vld [vmem:[%s2922_s19 + $0xf6] sm:$0xff] }
 0x2e8   : > { %2778 = vmatmul.msk.f32.gmra.mxu2 %vm2039_vm9, %v2014_v11  ;;  %v1802_v19 = vsel %vm1771_vm1, %v1765_v0, %v5048_v5  ;;  %v5053_v1 = vld [vmem:[#allocation84_spill] sm:$0xff]  ;;  %v5054_v5 = vld [vmem:[#allocation118_spill] sm:$0xff] }
 0x2e9   : > { %v1839_v27 = vsel %vm1808_vm2, %v1802_v19, %v5049_v56 }
 0x2ea   : > { %v1876_v47 = vsel %vm1845_vm3, %v1839_v27, %v5050_v14 }
 0x2eb   : > { %1496 = vrot.lane.b32.xlu2 %v2692_v26, %s2876_s26  ;;  %1694 = vrot.lane.b32.xlu1 %v2755_v40, %s2877_s27  ;;  %v1913_v18 = vsel %vm1882_vm4, %v1876_v47, %v3959_v34  ;;  %v2729_v40 = vld [vmem:[%s2922_s19 + $0x66] sm:$0xff] }
 0x2ec   : > { %1676 = vrot.lane.b32.xlu0 %v2746_v10, %s2877_s27  ;;  %v2738_v10 = vld [vmem:[%s2922_s19 + $0xae] sm:$0xff] }
 0x2ed   : > { %v1633_v2 = vpop.permute.xlu2 %1632  ;;  %v1399_v54 = vpop.permute.xlu1 %1398 }
 0x2ee   : > { %v1505_v35 = vpop.permute.xlu0 %1504  ;;  %v1997_v7 = vsel %vm1993_vm8, %v1960_v50, %v1633_v2  ;;  %v2702_v50 = vld [vmem:[%s2922_s19 + $0xad] sm:$0xff]  ;;  %v273_v2 = vld [vmem:[%s2922_s19 + $0xf8] sm:$0xff] }
 0x2ef   : > { %2761 = vmatmul.msk.f32.gmra.mxu0 %vm2039_vm9, %v1997_v7  ;;  %v1968_v61 = vsel %vm1956_vm7, %v4046_v6, %v1505_v35  ;;  %v1950_v6 = vsel %vm1919_vm5, %v1913_v18, %v1399_v54  ;;  %v5051_v54 = vld [vmem:[#allocation27_spill] sm:$0xff] }
 0x2f0   : > { %v1987_v44 = vsel %vm1956_vm7, %v1950_v6, %v4522_v15  ;;  %v5055_v6 = vld [vmem:[#allocation20_spill] sm:$0xff] }
 0x2f3   : > { %1640 = vrot.lane.b32.xlu2 %v2728_v24, %s2877_s27  ;;  %1408 = vrot.lane.b32.xlu1 %v2684_v8, %s2875_s25  ;;  %v5052_v24 = vld [vmem:[#allocation54_spill] sm:$0xff] }
 0x2f4   : > { %1514 = vrot.lane.b32.xlu0 %v2701_v30, %s2876_s26 }
 0x2f5   : > { %v1545_v48 = vpop.permute.xlu2 %1544  ;;  %v1525_v38 = vpop.permute.xlu1 %1524 }
 0x2f6   : > { %v1649_v29 = vpop.permute.xlu0 %1648  ;;  %v1978_v46 = vsel %vm1956_vm7, %v4355_v16, %v1525_v38 }
 0x2f7   : > { %v2005_v22 = vsel %vm1993_vm8, %v1968_v61, %v1649_v29 }
 0x2f8   : > { %2769 = vmatmul.msk.f32.gmra.mxu1 %vm2039_vm9, %v2005_v22 }
 0x2fb   : > { %1552 = vrot.lane.b32.xlu2 %v2720_v57, %s2876_s26  ;;  %1534 = vrot.lane.b32.xlu1 %v2711_v59, %s2876_s26 }
 0x2fc   : > { %1658 = vrot.lane.b32.xlu0 %v2737_v45, %s2877_s27 }
 0x2fd   : > { %v1491_v20 = vpop.permute.xlu2 %1490  ;;  %v1687_v60 = vpop.permute.xlu1 %1686 }
 0x2fe   : > { %v1669_v34 = vpop.permute.xlu0 %1668  ;;  %v2024_v43 = vsel %vm1993_vm8, %v1987_v44, %v1687_v60  ;;  %v1961_v16 = vsel %vm1956_vm7, %v4097_v13, %v1491_v20  ;;  %v1766_v13 = vsel %vm1734_vm0, %v273_v2, %v5051_v54 }
 0x2ff   : > { %v2015_v39 = vsel %vm1993_vm8, %v1978_v46, %v1669_v34  ;;  %2788 = vmatmul.msk.f32.gmra.mxu3 %vm2039_vm9, %v2024_v43  ;;  %v1803_v8 = vsel %vm1771_vm1, %v1766_v13, %v5052_v24  ;;  %v5056_v46 = vld [vmem:[#allocation47_spill] sm:$0xff] }
 0x300   : > { %2779 = vmatmul.msk.f32.gmra.mxu2 %vm2039_vm9, %v2015_v39  ;;  %v1840_v0 = vsel %vm1808_vm2, %v1803_v8, %v5053_v1  ;;  %v5057_v39 = vld [vmem:[#allocation77_spill] sm:$0xff] }
 0x301   : > { %v1877_v19 = vsel %vm1845_vm3, %v1840_v0, %v5054_v5 }
 0x302   : > { %v1914_v61 = vsel %vm1882_vm4, %v1877_v19, %v3953_v25 }
 0x303   : > { %1498 = vrot.lane.b32.xlu2 %v2693_v31, %s2876_s26  ;;  %1696 = vrot.lane.b32.xlu1 %v2756_v28, %s2877_s27 }
 0x304   : > { %1678 = vrot.lane.b32.xlu0 %v2747_v33, %s2877_s27  ;;  %v5058_v33 = vld [vmem:[#allocation107_spill] sm:$0xff] }
 0x305   : > { %v1635_v15 = vpop.permute.xlu2 %1634  ;;  %v1401_v9 = vpop.permute.xlu1 %1400 }
 0x306   : > { %v1507_v11 = vpop.permute.xlu0 %1506  ;;  %v1998_v26 = vsel %vm1993_vm8, %v1961_v16, %v1635_v15  ;;  %v1951_v29 = vsel %vm1919_vm5, %v1914_v61, %v1401_v9  ;;  %v5059_v15 = vld [vmem:[#allocation122_spill] sm:$0xff] }
 0x307   : > { %2762 = vmatmul.msk.f32.gmra.mxu0 %vm2039_vm9, %v1998_v26  ;;  %v1969_v30 = vsel %vm1956_vm7, %v4245_v3, %v1507_v11  ;;  %v1988_v3 = vsel %vm1956_vm7, %v1951_v29, %v1545_v48 }
 0x30b   : > { %1642 = vrot.lane.b32.xlu1 %v2729_v40, %s2877_s27  ;;  %1660 = vrot.lane.b32.xlu2 %v2738_v10, %s2877_s27 }
 0x30c   : > { %1516 = vrot.lane.b32.xlu0 %v2702_v50, %s2876_s26 }
 0x30d   : > { %v1547_v35 = vpop.permute.xlu2 %1546  ;;  %v1527_v7 = vpop.permute.xlu1 %1526 }
 0x30e   : > { %v1651_v52 = vpop.permute.xlu0 %1650  ;;  %v1979_v22 = vsel %vm1956_vm7, %v4351_v55, %v1527_v7  ;;  %v274_v55 = vld [vmem:[%s2922_s19 + $0x100] sm:$0xff] }
 0x30f   : > { %v2006_v38 = vsel %vm1993_vm8, %v1969_v30, %v1651_v52  ;;  %v1767_v20 = vsel %vm1734_vm0, %v274_v55, %v5055_v6 }
 0x310   : > { %2770 = vmatmul.msk.f32.gmra.mxu1 %vm2039_vm9, %v2006_v38  ;;  %v1804_v34 = vsel %vm1771_vm1, %v1767_v20, %v5056_v46 }
 0x311   : > { %v1841_v31 = vsel %vm1808_vm2, %v1804_v34, %v5057_v39 }
 0x312   : > { %v1878_v16 = vsel %vm1845_vm3, %v1841_v31, %v5058_v33 }
 0x313   : > { %v1915_v9 = vsel %vm1882_vm4, %v1878_v16, %v5059_v15 }
 0x315   : > { %v1493_v56 = vpop.permute.xlu2 %1492  ;;  %v1689_v27 = vpop.permute.xlu1 %1688 }
 0x316   : > { %v1671_v14 = vpop.permute.xlu0 %1670  ;;  %v2025_v47 = vsel %vm1993_vm8, %v1988_v3, %v1689_v27  ;;  %v1962_v25 = vsel %vm1956_vm7, %v3957_v49, %v1493_v56 }
 0x317   : > { %v2016_v57 = vsel %vm1993_vm8, %v1979_v22, %v1671_v14  ;;  %2789 = vmatmul.msk.f32.gmra.mxu3 %vm2039_vm9, %v2025_v47 }
 0x318   : > { %2780 = vmatmul.msk.f32.gmra.mxu2 %vm2039_vm9, %v2016_v57 }
 0x31d   : > { %v1637_v59 = vpop.permute.xlu2 %1636  ;;  %v1403_v18 = vpop.permute.xlu1 %1402 }
 0x31e   : > { %v1509_v45 = vpop.permute.xlu0 %1508  ;;  %v1999_v48 = vsel %vm1993_vm8, %v1962_v25, %v1637_v59  ;;  %v1952_v11 = vsel %vm1919_vm5, %v1915_v9, %v1403_v18 }
 0x31f   : > { %2763 = vmatmul.msk.f32.gmra.mxu0 %vm2039_vm9, %v1999_v48  ;;  %v1970_v43 = vsel %vm1956_vm7, %v4241_v42, %v1509_v45  ;;  %v1989_v42 = vsel %vm1956_vm7, %v1952_v11, %v1547_v35 }
 0x325   : > { %v1549_v60 = vpop.permute.xlu2 %1548  ;;  %v1529_v44 = vpop.permute.xlu1 %1528 }
 0x326   : > { %v1653_v49 = vpop.permute.xlu0 %1652  ;;  %v1980_v10 = vsel %vm1956_vm7, %v4238_v41, %v1529_v44  ;;  %v4671_v41 = vld [vmem:[%s4812_s2] ss:$0 sm:$0xff] }
 0x327   : > { %v2007_v28 = vsel %vm1993_vm8, %v1970_v43, %v1653_v49 }
 0x328   : > { %2771 = vmatmul.msk.f32.gmra.mxu1 %vm2039_vm9, %v2007_v28 }
 0x32d   : > { %v1495_v26 = vpop.permute.xlu2 %1494  ;;  %v1691_v40 = vpop.permute.xlu1 %1690 }
 0x32e   : > { %v1673_v50 = vpop.permute.xlu0 %1672  ;;  %v2026_v2 = vsel %vm1993_vm8, %v1989_v42, %v1691_v40  ;;  %v1963_v13 = vsel %vm1956_vm7, %v4149_v23, %v1495_v26 }
 0x32f   : > { %v2017_v54 = vsel %vm1993_vm8, %v1980_v10, %v1673_v50  ;;  %2790 = vmatmul.msk.f32.gmra.mxu3 %vm2039_vm9, %v2026_v2 }
 0x330   : > { %2781 = vmatmul.msk.f32.gmra.mxu2 %vm2039_vm9, %v2017_v54 }
 0x335   : > { %v1639_v7 = vpop.permute.xlu2 %1638  ;;  %v1405_v24 = vpop.permute.xlu1 %1404 }
 0x336   : > { %v1511_v8 = vpop.permute.xlu0 %1510  ;;  %v2000_v35 = vsel %vm1993_vm8, %v1963_v13, %v1639_v7  ;;  %v1953_v27 = vsel %vm1919_vm5, %v4005_v63, %v1405_v24 }
 0x337   : > { %2764 = vmatmul.msk.f32.gmra.mxu0 %vm2039_vm9, %v2000_v35  ;;  %v1971_v5 = vsel %vm1956_vm7, %v4094_v53, %v1511_v8  ;;  %v1990_v25 = vsel %vm1956_vm7, %v1953_v27, %v1549_v60 }
 0x33a   : > { %v2223_v23 = vpop.f32.mrf.mxu2 }
 0x33b   : > { %v2224_v30 = vadd.f32 %v4671_v41, %v2223_v23 }
 0x33c   : > { %v2250_v52 = vpop.f32.mrf.mxu3 }
 0x33d   : > { %2295 = vst [vmem:[%s4676_s20 + $0x90] sm:$0xff] %v2224_v30  ;;  %v2251_v1 = vadd.f32 %v4671_v41, %v2250_v52  ;;  %v1551_v0 = vpop.permute.xlu2 %1550  ;;  %v1531_v38 = vpop.permute.xlu1 %1530 }
 0x33e   : > { %v1655_v19 = vpop.permute.xlu0 %1654  ;;  %v2169_v61 = vpop.f32.mrf.mxu0  ;;  %v1981_v53 = vsel %vm1956_vm7, %v4387_v51, %v1531_v38 }
 0x33f   : > { %2304 = vst [vmem:[%s4676_s20 + $0xd8] sm:$0xff] %v2251_v1  ;;  %v2170_v29 = vadd.f32 %v4671_v41, %v2169_v61  ;;  %v2008_v56 = vsel %vm1993_vm8, %v1971_v5, %v1655_v19 }
 0x340   : > { %2772 = vmatmul.msk.f32.gmra.mxu1 %vm2039_vm9, %v2008_v56 }
 0x341   : > { %2277 = vst [vmem:[%s4676_s20] sm:$0xff] %v2170_v29 }
 0x345   : > { %v2196_v3 = vpop.f32.mrf.mxu1  ;;  %v1497_v22 = vpop.permute.xlu2 %1496 }
 0x346   : > { %v2197_v14 = vadd.f32 %v4671_v41, %v2196_v3  ;;  %v1693_v47 = vpop.permute.xlu1 %1692  ;;  %v1675_v57 = vpop.permute.xlu0 %1674  ;;  %v1964_v51 = vsel %vm1956_vm7, %v4145_v17, %v1497_v22 }
 0x347   : > { %v2172_v59 = vpop.f32.mrf.mxu0  ;;  %v2018_v18 = vsel %vm1993_vm8, %v1981_v53, %v1675_v57  ;;  %v2027_v45 = vsel %vm1993_vm8, %v1990_v25, %v1693_v47 }
 0x348   : > { %2286 = vst [vmem:[%s4676_s20 + $0x48] sm:$0xff] %v2197_v14  ;;  %v2173_v63 = vadd.f32 %v4671_v41, %v2172_v59  ;;  %2782 = vmatmul.msk.f32.gmra.mxu2 %vm2039_vm9, %v2018_v18  ;;  %2791 = vmatmul.msk.f32.gmra.mxu3 %vm2039_vm9, %v2027_v45 }
 0x34a   : > { %2278 = vst [vmem:[%s4676_s20 + $0x8] sm:$0xff] %v2173_v63 }
 0x34d   : > { %v1641_v48 = vpop.permute.xlu2 %1640 }
 0x34e   : > { %v1407_v55 = vpop.permute.xlu1 %1406  ;;  %v1513_v6 = vpop.permute.xlu0 %1512  ;;  %v2001_v20 = vsel %vm1993_vm8, %v1964_v51, %v1641_v48 }
 0x34f   : > { %2765 = vmatmul.msk.f32.gmra.mxu0 %vm2039_vm9, %v2001_v20  ;;  %v1972_v17 = vsel %vm1956_vm7, %v4293_v21, %v1513_v6  ;;  %v1954_v33 = vsel %vm1919_vm5, %v4001_v32, %v1407_v55 }
 0x350   : > { %v1991_v26 = vsel %vm1956_vm7, %v1954_v33, %v1551_v0 }
 0x352   : > { %v2253_v60 = vpop.f32.mrf.mxu3 }
 0x353   : > { %v2226_v44 = vpop.f32.mrf.mxu2  ;;  %v2254_v46 = vadd.f32 %v4671_v41, %v2253_v60 }
 0x354   : > { %v2227_v34 = vadd.f32 %v4671_v41, %v2226_v44  ;;  %v2175_v43 = vpop.f32.mrf.mxu0 }
 0x355   : > { %2305 = vst [vmem:[%s4676_s20 + $0xe0] sm:$0xff] %v2254_v46  ;;  %v2176_v49 = vadd.f32 %v4671_v41, %v2175_v43  ;;  %v1553_v50 = vpop.permute.xlu2 %1552 }
 0x356   : > { %2296 = vst [vmem:[%s4676_s20 + $0x98] sm:$0xff] %v2227_v34  ;;  %v1533_v39 = vpop.permute.xlu1 %1532  ;;  %v1657_v31 = vpop.permute.xlu0 %1656 }
 0x357   : > { %2279 = vst [vmem:[%s4676_s20 + $0x10] sm:$0xff] %v2176_v49  ;;  %v2009_v28 = vsel %vm1993_vm8, %v1972_v17, %v1657_v31  ;;  %v1982_v15 = vsel %vm1956_vm7, %v4384_v62, %v1533_v39 }
 0x358   : > { %2773 = vmatmul.msk.f32.gmra.mxu1 %vm2039_vm9, %v2009_v28 }
 0x35d   : > { %v2199_v16 = vpop.f32.mrf.mxu1  ;;  %v1499_v1 = vpop.permute.xlu2 %1498 }
 0x35e   : > { %v2200_v9 = vadd.f32 %v4671_v41, %v2199_v16  ;;  %v1695_v11 = vpop.permute.xlu1 %1694  ;;  %v1677_v21 = vpop.permute.xlu0 %1676 }
 0x35f   : > { %v2019_v40 = vsel %vm1993_vm8, %v1982_v15, %v1677_v21  ;;  %v2028_v42 = vsel %vm1993_vm8, %v1991_v26, %v1695_v11 }
 0x360   : > { %2287 = vst [vmem:[%s4676_s20 + $0x50] sm:$0xff] %v2200_v9  ;;  %2783 = vmatmul.msk.f32.gmra.mxu2 %vm2039_vm9, %v2019_v40  ;;  %2792 = vmatmul.msk.f32.gmra.mxu3 %vm2039_vm9, %v2028_v42 }
 0x366   : > { %v1409_v32 = vpop.permute.xlu1 %1408  ;;  %v1515_v62 = vpop.permute.xlu0 %1514 }
 0x367   : > { %v1973_v8 = vsel %vm1956_vm7, %v4287_v37, %v1515_v62  ;;  %v1955_v52 = vsel %vm1919_vm5, %v3909_v36, %v1409_v32  ;;  %v1661_v36 = vpop.permute.xlu2 %1660 }
 0x368   : > { %v1992_v61 = vsel %vm1956_vm7, %v1955_v52, %v1553_v50 }
 0x36a   : > { %v2256_v10 = vpop.f32.mrf.mxu3 }
 0x36b   : > { %v2229_v2 = vpop.f32.mrf.mxu2  ;;  %v2257_v54 = vadd.f32 %v4671_v41, %v2256_v10 }
 0x36c   : > { %v2230_v13 = vadd.f32 %v4671_v41, %v2229_v2  ;;  %v2178_v7 = vpop.f32.mrf.mxu0 }
 0x36d   : > { %2306 = vst [vmem:[%s4676_s20 + $0xe8] sm:$0xff] %v2257_v54  ;;  %v2179_v24 = vadd.f32 %v4671_v41, %v2178_v7 }
 0x36e   : > { %2297 = vst [vmem:[%s4676_s20 + $0xa0] sm:$0xff] %v2230_v13  ;;  %v1535_v35 = vpop.permute.xlu1 %1534  ;;  %v1659_v23 = vpop.permute.xlu0 %1658 }
 0x36f   : > { %2280 = vst [vmem:[%s4676_s20 + $0x18] sm:$0xff] %v2179_v24  ;;  %v2010_v30 = vsel %vm1993_vm8, %v1973_v8, %v1659_v23  ;;  %v1983_v38 = vsel %vm1956_vm7, %v4284_v4, %v1535_v35  ;;  %v1965_v4 = vsel %vm1956_vm7, %v3998_v12, %v1499_v1 }
 0x370   : > { %2774 = vmatmul.msk.f32.gmra.mxu1 %vm2039_vm9, %v2010_v30 }
 0x375   : > { %v2202_v0 = vpop.f32.mrf.mxu1 }
 0x376   : > { %v2203_v5 = vadd.f32 %v4671_v41, %v2202_v0  ;;  %v1697_v37 = vpop.permute.xlu1 %1696  ;;  %v1679_v19 = vpop.permute.xlu0 %1678 }
 0x377   : > { %v2020_v29 = vsel %vm1993_vm8, %v1983_v38, %v1679_v19  ;;  %v2029_v56 = vsel %vm1993_vm8, %v1992_v61, %v1697_v37 }
 0x378   : > { %2288 = vst [vmem:[%s4676_s20 + $0x58] sm:$0xff] %v2203_v5  ;;  %2784 = vmatmul.msk.f32.gmra.mxu2 %vm2039_vm9, %v2020_v29  ;;  %2793 = vmatmul.msk.f32.gmra.mxu3 %vm2039_vm9, %v2029_v56 }
 0x37e   : > { %v1643_v27 = vpop.permute.xlu1 %1642  ;;  %v1517_v3 = vpop.permute.xlu0 %1516 }
 0x37f   : > { %v1974_v22 = vsel %vm1956_vm7, %v4142_v58, %v1517_v3  ;;  %v2002_v53 = vsel %vm1993_vm8, %v1965_v4, %v1643_v27 }
 0x380   : > { %2766 = vmatmul.msk.f32.gmra.mxu0 %vm2039_vm9, %v2002_v53  ;;  %v2011_v14 = vsel %vm1993_vm8, %v1974_v22, %v1661_v36 }
 0x381   : > { %2775 = vmatmul.msk.f32.gmra.mxu1 %vm2039_vm9, %v2011_v14 }
 0x382   : > { %v2259_v47 = vpop.f32.mrf.mxu3 }
 0x383   : > { %v2232_v57 = vpop.f32.mrf.mxu2  ;;  %v2260_v12 = vadd.f32 %v4671_v41, %v2259_v47 }
 0x384   : > { %v2233_v25 = vadd.f32 %v4671_v41, %v2232_v57  ;;  %v2181_v59 = vpop.f32.mrf.mxu0 }
 0x385   : > { %2307 = vst [vmem:[%s4676_s20 + $0xf0] sm:$0xff] %v2260_v12  ;;  %v2182_v58 = vadd.f32 %v4671_v41, %v2181_v59 }
 0x386   : > { %2298 = vst [vmem:[%s4676_s20 + $0xa8] sm:$0xff] %v2233_v25 }
 0x387   : > { %2281 = vst [vmem:[%s4676_s20 + $0x20] sm:$0xff] %v2182_v58 }
 0x38d   : > { %v2205_v18 = vpop.f32.mrf.mxu1 }
 0x38e   : > { %v2206_v45 = vadd.f32 %v4671_v41, %v2205_v18 }
 0x390   : > { %2289 = vst [vmem:[%s4676_s20 + $0x60] sm:$0xff] %v2206_v45 }
 0x39a   : > { %v2262_v63 = vpop.f32.mrf.mxu3 }
 0x39b   : > { %v2235_v51 = vpop.f32.mrf.mxu2  ;;  %v2263_v48 = vadd.f32 %v4671_v41, %v2262_v63 }
 0x39c   : > { %v2236_v55 = vadd.f32 %v4671_v41, %v2235_v51  ;;  %v2184_v6 = vpop.f32.mrf.mxu0 }
 0x39d   : > { %2308 = vst [vmem:[%s4676_s20 + $0xf8] sm:$0xff] %v2263_v48  ;;  %v2185_v20 = vadd.f32 %v4671_v41, %v2184_v6 }
 0x39e   : > { %2299 = vst [vmem:[%s4676_s20 + $0xb0] sm:$0xff] %v2236_v55 }
 0x39f   : > { %2282 = vst [vmem:[%s4676_s20 + $0x28] sm:$0xff] %v2185_v20 }
 0x3a5   : > { %v2208_v60 = vpop.f32.mrf.mxu1 }
 0x3a6   : > { %v2209_v44 = vadd.f32 %v4671_v41, %v2208_v60 }
 0x3a8   : > { %2290 = vst [vmem:[%s4676_s20 + $0x68] sm:$0xff] %v2209_v44 }
 0x3b2   : > { %v2265_v46 = vpop.f32.mrf.mxu3 }
 0x3b3   : > { %v2238_v34 = vpop.f32.mrf.mxu2  ;;  %v2266_v43 = vadd.f32 %v4671_v41, %v2265_v46 }
 0x3b4   : > { %v2239_v49 = vadd.f32 %v4671_v41, %v2238_v34  ;;  %v2187_v17 = vpop.f32.mrf.mxu0 }
 0x3b5   : > { %2309 = vst [vmem:[%s4676_s20 + $0x100] sm:$0xff] %v2266_v43  ;;  %v2188_v39 = vadd.f32 %v4671_v41, %v2187_v17 }
 0x3b6   : > { %2300 = vst [vmem:[%s4676_s20 + $0xb8] sm:$0xff] %v2239_v49 }
 0x3b7   : > { %2283 = vst [vmem:[%s4676_s20 + $0x30] sm:$0xff] %v2188_v39 }
 0x3bd   : > { %v2211_v31 = vpop.f32.mrf.mxu1 }
 0x3be   : > { %v2212_v28 = vadd.f32 %v4671_v41, %v2211_v31 }
 0x3c0   : > { %2291 = vst [vmem:[%s4676_s20 + $0x70] sm:$0xff] %v2212_v28 }
 0x3cb   : > { %v2241_v33 = vpop.f32.mrf.mxu2  ;;  %v2268_v16 = vpop.f32.mrf.mxu3 }
 0x3cc   : > { %v2242_v15 = vadd.f32 %v4671_v41, %v2241_v33  ;;  %v2269_v9 = vadd.f32 %v4671_v41, %v2268_v16  ;;  %v2190_v11 = vpop.f32.mrf.mxu0 }
 0x3cd   : > { %v2191_v21 = vadd.f32 %v4671_v41, %v2190_v11 }
 0x3ce   : > { %2301 = vst [vmem:[%s4676_s20 + $0xc0] sm:$0xff] %v2242_v15 }
 0x3cf   : > { %2310 = vst [vmem:[%s4676_s20 + $0x108] sm:$0xff] %v2269_v9 }
 0x3d0   : > { %2284 = vst [vmem:[%s4676_s20 + $0x38] sm:$0xff] %v2191_v21 }
 0x3d5   : > { %v2214_v26 = vpop.f32.mrf.mxu1 }
 0x3d6   : > { %v2215_v40 = vadd.f32 %v4671_v41, %v2214_v26 }
 0x3d8   : > { %2292 = vst [vmem:[%s4676_s20 + $0x78] sm:$0xff] %v2215_v40 }
 0x3e3   : > { %v2244_v42 = vpop.f32.mrf.mxu2  ;;  %v2271_v32 = vpop.f32.mrf.mxu3 }
 0x3e4   : > { %v2245_v62 = vadd.f32 %v4671_v41, %v2244_v42  ;;  %v2272_v10 = vadd.f32 %v4671_v41, %v2271_v32 }
 0x3e6   : > { %2302 = vst [vmem:[%s4676_s20 + $0xc8] sm:$0xff] %v2245_v62 }
 0x3e7   : > { %2311 = vst [vmem:[%s4676_s20 + $0x110] sm:$0xff] %v2272_v10 }
 0x3ed   : > { %v2217_v50 = vpop.f32.mrf.mxu1 }
 0x3ee   : > { %v2218_v2 = vadd.f32 %v4671_v41, %v2217_v50 }
 0x3f0   : > { %2293 = vst [vmem:[%s4676_s20 + $0x80] sm:$0xff] %v2218_v2 }
 0x3fb   : > { %v2247_v54 = vpop.f32.mrf.mxu2  ;;  %v2274_v13 = vpop.f32.mrf.mxu3 }
 0x3fc   : > { %v2248_v7 = vadd.f32 %v4671_v41, %v2247_v54  ;;  %v2275_v24 = vadd.f32 %v4671_v41, %v2274_v13 }
 0x3fd   : > { %v2193_v8 = vpop.f32.mrf.mxu0 }
 0x3fe   : > { %2303 = vst [vmem:[%s4676_s20 + $0xd0] sm:$0xff] %v2248_v7  ;;  %v2194_v35 = vadd.f32 %v4671_v41, %v2193_v8  ;;  %v2220_v23 = vpop.f32.mrf.mxu1 }
 0x3ff   : > { %2312 = vst [vmem:[%s4676_s20 + $0x118] sm:$0xff] %v2275_v24  ;;  %v2221_v30 = vadd.f32 %v4671_v41, %v2220_v23 }
 0x400   : > { %2285 = vst [vmem:[%s4676_s20 + $0x40] sm:$0xff] %v2194_v35 }
 0x401   : > { %2294 = vst [vmem:[%s4676_s20 + $0x88] sm:$0xff] %v2221_v30 }
 0x402 PF: > { %s13_s14 = sadd.s32 1, %s2868_s14   ;;  %s5060_s12 = smov %s2864_s13 }
 0x403   : > { %p10_p5 = scmp.ge.s32.totalorder %s13_s14, 4   ;;  %s5061_s13 = smov %s5063_s15 }
 0x405   :  { %12 = sbr.rel (!%p10_p5) target bundleno = 2 (0x2), region = 77 }

</bundles_post_ra>
